<compile_context>
chip_gen: v6e
topology: v6e:2x2x1
jax: 0.10.0
libtpu: 0.0.40
codegen_flags: <defaults>
</compile_context>

<pallas_src>
import functools

import numpy as np
import jax
import jax.numpy as jnp
from jax.experimental import pallas as pl
from jax.experimental.pallas import tpu as pltpu

_BN_EPS = 1e-5


def _resnet_block_kernel(x_ref, w1_ref, w2_ref, w3_ref, g_ref, p_ref, m_ref,
                         o_ref, scr_ref, *, inv_count):
    """Whole block in one program. x_ref: (R, L) = (N*H, W*C), lane = x*C+c."""
    R, L = x_ref.shape
    x = x_ref[...]                                        # (R, L) f32

    def mm(a, w_bf16):                                    # bf16 MXU, f32 accum
        return jnp.dot(a.astype(jnp.bfloat16), w_bf16,
                       preferred_element_type=jnp.float32)

    def bn(h, gamma, beta):
        # Training-mode BatchNorm2d: batch stats, biased variance, eps=1e-5.
        # One pass over h; per-lane sums are aggregated over the W lane groups
        # that share a channel with one tiny matmul against G, then applied as
        # a fused h*scale + shift (2 VPU ops per element).
        s = jnp.sum(h, axis=0, keepdims=True)             # (1, L)
        sq = jnp.sum(h * h, axis=0, keepdims=True)        # (1, L)
        mean = jnp.dot(s, g_ref[...],
                       preferred_element_type=jnp.float32) * inv_count
        ex2 = jnp.dot(sq, g_ref[...],
                      preferred_element_type=jnp.float32) * inv_count
        var = ex2 - mean * mean
        scale = gamma * jax.lax.rsqrt(var + _BN_EPS)
        shift = beta - mean * scale
        return h * scale + shift

    def prelu(h, alpha):
        return jnp.where(h >= 0.0, h, alpha * h)

    # ---- conv1 (1x1 == block-diagonal matmul) + bn1 + prelu1 ----
    h = mm(x, w1_ref[...]) + p_ref[0:1, :]
    h = prelu(bn(h, p_ref[1:2, :], p_ref[2:3, :]), p_ref[3:4, :])

    # ---- conv2 (3x3, padding=1) + bn2 + prelu2 ----
    # dx taps + width padding are inside the three block-tridiagonal (L, L)
    # weight matrices; dy = +/-1 taps are +/-1-row windows of an 8-row-halo
    # scratch (interior store is sublane aligned; only the halo is zeroed),
    # masked so no row reads across an image / height boundary.
    scr_ref[pl.ds(0, 8), :] = jnp.zeros((8, L), jnp.float32)
    scr_ref[pl.ds(R + 8, 8), :] = jnp.zeros((8, L), jnp.float32)
    scr_ref[pl.ds(8, R), :] = h
    up = scr_ref[pl.ds(7, R), :] * m_ref[:, 0:1]          # h[r-1], 0 where y==0
    down = scr_ref[pl.ds(9, R), :] * m_ref[:, 1:2]        # h[r+1], 0 where y==H-1
    h = (mm(up, w2_ref[0:L, :]) + mm(h, w2_ref[L:2 * L, :])
         + mm(down, w2_ref[2 * L:3 * L, :]) + p_ref[4:5, :])
    h = prelu(bn(h, p_ref[5:6, :], p_ref[6:7, :]), p_ref[7:8, :])

    # ---- conv3 (1x1) + bn3 + residual add + prelu3 ----
    h = mm(h, w3_ref[...]) + p_ref[8:9, :]
    h = bn(h, p_ref[9:10, :], p_ref[10:11, :]) + x
    o_ref[...] = prelu(h, p_ref[11:12, :])                # full-lane, unmasked store


def resnet_block_2d(x_nchw, params):
    """Pallas TPU ResnetBlock2d forward. Input/output are NCHW float32."""
    N, C, H, W = x_nchw.shape
    L = W * C                                             # packed lane width
    R = N * H                                             # one image row per row

    # NCHW -> NHWC -> (N*H, W*C): pure layout plumbing, done once in XLA.
    x2d = jnp.transpose(x_nchw, (0, 2, 3, 1)).reshape(R, L).astype(jnp.float32)

    eye_w = jnp.eye(W, dtype=jnp.float32)

    def conv1x1_mat(w):                                   # w: (Cout, Cin, 1, 1)
        return jnp.kron(eye_w, w[:, :, 0, 0].T).astype(jnp.bfloat16)   # (L, L)

    w1 = conv1x1_mat(params["conv1_w"])
    w3 = conv1x1_mat(params["conv3_w"])

    # 3x3 conv: one block-tridiagonal (L, L) matrix per ky (dy = ky - 1). The
    # missing off-diagonal blocks at x == 0 / x == W-1 implement the width
    # zero-padding, so no per-tap masks or padded-width scratch are needed.
    taps = []
    for ky in range(3):
        m = jnp.zeros((L, L), jnp.float32)
        for kx in range(3):
            dx = kx - 1                                   # input x = output x + dx
            shift = jnp.eye(W, k=-dx, dtype=jnp.float32)  # [xi, xo]=1 iff xi-xo==dx
            m = m + jnp.kron(shift, params["conv2_w"][:, :, ky, kx].T)
        taps.append(m)
    w2 = jnp.concatenate(taps, axis=0).astype(jnp.bfloat16)            # (3L, L)

    # G[l1, l2] = 1 iff lanes share a channel (l1 % C == l2 % C): aggregates and
    # re-broadcasts per-channel BN statistics with one small matmul.
    gmat = jnp.kron(jnp.ones((W, W), jnp.float32), jnp.eye(C, dtype=jnp.float32))

    def lanes(v):                                         # per-channel -> per-lane
        return jnp.tile(v.astype(jnp.float32), W)

    p = jnp.stack([
        lanes(params["conv1_b"]), lanes(params["bn1_g"]),
        lanes(params["bn1_b"]), lanes(params["prelu1_a"]),
        lanes(params["conv2_b"]), lanes(params["bn2_g"]),
        lanes(params["bn2_b"]), lanes(params["prelu2_a"]),
        lanes(params["conv3_b"]), lanes(params["bn3_g"]),
        lanes(params["bn3_b"]), lanes(params["prelu3_a"]),
    ], axis=0)                                            # (12, L)

    # Row-validity masks for the two vertical conv2 taps (static, tiny).
    y = np.arange(R) % H
    masks = jnp.asarray(
        np.stack([(y != 0), (y != H - 1)], axis=1).astype(np.float32))  # (R, 2)

    kernel = functools.partial(_resnet_block_kernel,
                               inv_count=1.0 / float(N * H * W))

    # NOTE: one lane-dense block is optimal at these sizes; for much larger
    # N*H*W, tile R over a "parallel" grid axis (v7x megacore) with a two-pass
    # BN (per-tile sum/sum-sq accumulation, then normalize) and set
    # vmem_limit_bytes explicitly.
    out2d = pl.pallas_call(
        kernel,
        out_shape=jax.ShapeDtypeStruct((R, L), jnp.float32),
        grid=(1,),
        in_specs=[
            pl.BlockSpec((R, L), lambda i: (0, 0)),       # x (lane-dense)
            pl.BlockSpec((L, L), lambda i: (0, 0)),       # conv1 block-diag
            pl.BlockSpec((3 * L, L), lambda i: (0, 0)),   # conv2 tri-diag taps
            pl.BlockSpec((L, L), lambda i: (0, 0)),       # conv3 block-diag
            pl.BlockSpec((L, L), lambda i: (0, 0)),       # G (BN channel agg)
            pl.BlockSpec((12, L), lambda i: (0, 0)),      # packed per-channel params
            pl.BlockSpec((R, 2), lambda i: (0, 0)),       # conv2 row masks
        ],
        out_specs=pl.BlockSpec((R, L), lambda i: (0, 0)),  # lane-dense store
        scratch_shapes=[pltpu.VMEM((R + 16, L), jnp.float32)],
        compiler_params=pltpu.CompilerParams(dimension_semantics=("arbitrary",)),
    )(x2d, w1, w2, w3, gmat, p, masks)

    return jnp.transpose(out2d.reshape(N, H, W, C), (0, 3, 1, 2))


def resnet_block_2d_reference(x_nchw, params):
    """Pure-JAX reference with lax.conv (same math as the torch forward)."""
    x = jnp.transpose(x_nchw, (0, 2, 3, 1))  # NHWC

    def conv(h, w, b, padding):
        wh = jnp.transpose(w, (2, 3, 1, 0))  # OIHW -> HWIO
        out = jax.lax.conv_general_dilated(
            h, wh, window_strides=(1, 1), padding=padding,
            dimension_numbers=("NHWC", "HWIO", "NHWC"),
            precision=jax.lax.Precision.HIGHEST)
        return out + b.reshape(1, 1, 1, -1)

    def bn(h, g, bta):
        mean = jnp.mean(h, axis=(0, 1, 2), keepdims=True)
        var = jnp.mean((h - mean) ** 2, axis=(0, 1, 2), keepdims=True)
        return ((h - mean) * jax.lax.rsqrt(var + _BN_EPS)
                * g.reshape(1, 1, 1, -1) + bta.reshape(1, 1, 1, -1))

    def prelu(h, a):
        return jnp.where(h >= 0, h, a.reshape(1, 1, 1, -1) * h)

    identity = x
    out = conv(x, params["conv1_w"], params["conv1_b"], ((0, 0), (0, 0)))
    out = bn(out, params["bn1_g"], params["bn1_b"])
    out = prelu(out, params["prelu1_a"])
    out = conv(out, params["conv2_w"], params["conv2_b"], ((1, 1), (1, 1)))
    out = bn(out, params["bn2_g"], params["bn2_b"])
    out = prelu(out, params["prelu2_a"])
    out = conv(out, params["conv3_w"], params["conv3_b"], ((0, 0), (0, 0)))
    out = bn(out, params["bn3_g"], params["bn3_b"])
    out = out + identity
    out = prelu(out, params["prelu3_a"])
    return jnp.transpose(out, (0, 3, 1, 2))


if __name__ == "__main__":
    depth = 8            # channels; W*depth = 128 -> fully lane-dense layout
    N, H, W = 2, 16, 16

    key = jax.random.PRNGKey(0)
    ks = jax.random.split(key, 13)
    params = {
        "conv1_w": 0.3 * jax.random.normal(ks[0], (depth, depth, 1, 1), jnp.float32),
        "conv1_b": 0.1 * jax.random.normal(ks[1], (depth,), jnp.float32),
        "conv2_w": 0.2 * jax.random.normal(ks[2], (depth, depth, 3, 3), jnp.float32),
        "conv2_b": 0.1 * jax.random.normal(ks[3], (depth,), jnp.float32),
        "conv3_w": 0.3 * jax.random.normal(ks[4], (depth, depth, 1, 1), jnp.float32),
        "conv3_b": 0.1 * jax.random.normal(ks[5], (depth,), jnp.float32),
        "bn1_g": 1.0 + 0.1 * jax.random.normal(ks[6], (depth,), jnp.float32),
        "bn1_b": 0.1 * jax.random.normal(ks[7], (depth,), jnp.float32),
        "bn2_g": 1.0 + 0.1 * jax.random.normal(ks[8], (depth,), jnp.float32),
        "bn2_b": 0.1 * jax.random.normal(ks[9], (depth,), jnp.float32),
        "bn3_g": 1.0 + 0.1 * jax.random.normal(ks[10], (depth,), jnp.float32),
        "bn3_b": 0.1 * jax.random.normal(ks[11], (depth,), jnp.float32),
        "prelu1_a": jnp.full((depth,), 0.25, jnp.float32),   # PyTorch PReLU default
        "prelu2_a": jnp.full((depth,), 0.25, jnp.float32),
        "prelu3_a": jnp.full((depth,), 0.25, jnp.float32),
    }
    x = jax.random.normal(ks[12], (N, depth, H, W), jnp.float32)   # NCHW like torch

    out = jax.block_until_ready(resnet_block_2d(x, params))
    ref = jax.block_until_ready(resnet_block_2d_reference(x, params))

    assert out.shape == x.shape and out.dtype == jnp.float32
    # bf16 MXU operands (f32 accumulation) per the perf review -> tolerance is
    # relaxed relative to the all-f32 reference.
    np.testing.assert_allclose(np.asarray(out), np.asarray(ref), rtol=2e-2, atol=2e-2)
    print("KERNEL_OK")
</pallas_src>

<mosaic_0001>
module attributes {stable_mosaic.version = 11 : i64} {
  func.func @_resnet_block_kernel(%arg0: i32, %arg1: memref<32x128xf32, #tpu.memory_space<vmem>>, %arg2: memref<128x128xbf16, #tpu.memory_space<vmem>>, %arg3: memref<384x128xbf16, #tpu.memory_space<vmem>>, %arg4: memref<128x128xbf16, #tpu.memory_space<vmem>>, %arg5: memref<128x128xf32, #tpu.memory_space<vmem>>, %arg6: memref<12x128xf32, #tpu.memory_space<vmem>>, %arg7: memref<32x2xf32, #tpu.memory_space<vmem>>, %arg8: memref<32x128xf32, #tpu.memory_space<vmem>>, %arg9: memref<48x128xf32, #tpu.memory_space<vmem>>) attributes {dimension_semantics = [#tpu.dimension_semantics<arbitrary>], iteration_bounds = array<i64: 1>, scalar_prefetch = 0 : i64, scratch_operands = 1 : i64, tpu.core_type = #tpu.core_type<tc>, window_params = [{pipeline_mode = #tpu.pipeline_mode<synchronous>, transform_indices = @transform_0, window_bounds = array<i64: 32, 128>}, {pipeline_mode = #tpu.pipeline_mode<synchronous>, transform_indices = @transform_1, window_bounds = array<i64: 128, 128>}, {pipeline_mode = #tpu.pipeline_mode<synchronous>, transform_indices = @transform_2, window_bounds = array<i64: 384, 128>}, {pipeline_mode = #tpu.pipeline_mode<synchronous>, transform_indices = @transform_3, window_bounds = array<i64: 128, 128>}, {pipeline_mode = #tpu.pipeline_mode<synchronous>, transform_indices = @transform_4, window_bounds = array<i64: 128, 128>}, {pipeline_mode = #tpu.pipeline_mode<synchronous>, transform_indices = @transform_5, window_bounds = array<i64: 12, 128>}, {pipeline_mode = #tpu.pipeline_mode<synchronous>, transform_indices = @transform_6, window_bounds = array<i64: 32, 2>}, {pipeline_mode = #tpu.pipeline_mode<synchronous>, transform_indices = @transform_7, window_bounds = array<i64: 32, 128>}]} {
    %c0 = arith.constant 0 : index
    %c0_0 = arith.constant 0 : index
    %0 = vector.load %arg1[%c0, %c0_0] : memref<32x128xf32, #tpu.memory_space<vmem>>, vector<32x128xf32>
    %c0_1 = arith.constant 0 : index
    %c0_2 = arith.constant 0 : index
    %1 = vector.load %arg2[%c0_1, %c0_2] : memref<128x128xbf16, #tpu.memory_space<vmem>>, vector<128x128xbf16>
    %2 = arith.truncf %0 : vector<32x128xf32> to vector<32x128xbf16>
    %cst = arith.constant dense<0.000000e+00> : vector<32x128xf32>
    %3 = tpu.matmul %2, %1, %cst {dimension_numbers = #tpu.dot_dimension_numbers<[1], [0], [0], [1], [0, 0, 1, 1], [], []>} : vector<32x128xbf16>, vector<128x128xbf16>, vector<32x128xf32> -> vector<32x128xf32>
    %c0_3 = arith.constant 0 : index
    %c0_4 = arith.constant 0 : index
    %4 = vector.load %arg6[%c0_3, %c0_4] : memref<12x128xf32, #tpu.memory_space<vmem>>, vector<1x128xf32>
    %5 = vector.broadcast %4 : vector<1x128xf32> to vector<32x128xf32>
    %6 = arith.addf %3, %5 : vector<32x128xf32>
    %c1 = arith.constant 1 : index
    %c0_5 = arith.constant 0 : index
    %7 = vector.load %arg6[%c1, %c0_5] : memref<12x128xf32, #tpu.memory_space<vmem>>, vector<1x128xf32>
    %c2 = arith.constant 2 : index
    %c0_6 = arith.constant 0 : index
    %8 = vector.load %arg6[%c2, %c0_6] : memref<12x128xf32, #tpu.memory_space<vmem>>, vector<1x128xf32>
    %cst_7 = arith.constant dense<0.000000e+00> : vector<128xf32>
    %9 = vector.multi_reduction <add>, %6, %cst_7 [0] : vector<32x128xf32> to vector<128xf32>
    %10 = vector.shape_cast %9 : vector<128xf32> to vector<1x128xf32>
    %11 = arith.mulf %6, %6 : vector<32x128xf32>
    %cst_8 = arith.constant dense<0.000000e+00> : vector<128xf32>
    %12 = vector.multi_reduction <add>, %11, %cst_8 [0] : vector<32x128xf32> to vector<128xf32>
    %13 = vector.shape_cast %12 : vector<128xf32> to vector<1x128xf32>
    %c0_9 = arith.constant 0 : index
    %c0_10 = arith.constant 0 : index
    %14 = vector.load %arg5[%c0_9, %c0_10] : memref<128x128xf32, #tpu.memory_space<vmem>>, vector<128x128xf32>
    %cst_11 = arith.constant dense<0.000000e+00> : vector<1x128xf32>
    %15 = tpu.matmul %10, %14, %cst_11 {dimension_numbers = #tpu.dot_dimension_numbers<[1], [0], [0], [1], [0, 0, 1, 1], [], []>} : vector<1x128xf32>, vector<128x128xf32>, vector<1x128xf32> -> vector<1x128xf32>
    %cst_12 = arith.constant 0.001953125 : f32
    %16 = vector.broadcast %cst_12 : f32 to vector<1x128xf32>
    %17 = arith.mulf %15, %16 : vector<1x128xf32>
    %c0_13 = arith.constant 0 : index
    %c0_14 = arith.constant 0 : index
    %18 = vector.load %arg5[%c0_13, %c0_14] : memref<128x128xf32, #tpu.memory_space<vmem>>, vector<128x128xf32>
    %cst_15 = arith.constant dense<0.000000e+00> : vector<1x128xf32>
    %19 = tpu.matmul %13, %18, %cst_15 {dimension_numbers = #tpu.dot_dimension_numbers<[1], [0], [0], [1], [0, 0, 1, 1], [], []>} : vector<1x128xf32>, vector<128x128xf32>, vector<1x128xf32> -> vector<1x128xf32>
    %cst_16 = arith.constant 0.001953125 : f32
    %20 = vector.broadcast %cst_16 : f32 to vector<1x128xf32>
    %21 = arith.mulf %19, %20 : vector<1x128xf32>
    %22 = arith.mulf %17, %17 : vector<1x128xf32>
    %23 = arith.subf %21, %22 : vector<1x128xf32>
    %cst_17 = arith.constant 9.99999974E-6 : f32
    %24 = vector.broadcast %cst_17 : f32 to vector<1x128xf32>
    %25 = arith.addf %23, %24 : vector<1x128xf32>
    %26 = math.rsqrt %25 : vector<1x128xf32>
    %27 = arith.mulf %7, %26 : vector<1x128xf32>
    %28 = arith.mulf %17, %27 : vector<1x128xf32>
    %29 = arith.subf %8, %28 : vector<1x128xf32>
    %30 = vector.broadcast %27 : vector<1x128xf32> to vector<32x128xf32>
    %31 = arith.mulf %6, %30 : vector<32x128xf32>
    %32 = vector.broadcast %29 : vector<1x128xf32> to vector<32x128xf32>
    %33 = arith.addf %31, %32 : vector<32x128xf32>
    %c3 = arith.constant 3 : index
    %c0_18 = arith.constant 0 : index
    %34 = vector.load %arg6[%c3, %c0_18] : memref<12x128xf32, #tpu.memory_space<vmem>>, vector<1x128xf32>
    %cst_19 = arith.constant 0.000000e+00 : f32
    %35 = vector.broadcast %cst_19 : f32 to vector<32x128xf32>
    %36 = arith.cmpf oge, %33, %35 : vector<32x128xf32>
    %37 = vector.broadcast %34 : vector<1x128xf32> to vector<32x128xf32>
    %38 = arith.mulf %37, %33 : vector<32x128xf32>
    %39 = arith.select %36, %33, %38 : vector<32x128xi1>, vector<32x128xf32>
    %cst_20 = arith.constant 0.000000e+00 : f32
    %40 = vector.broadcast %cst_20 : f32 to vector<8x128xf32>
    %c0_21 = arith.constant 0 : index
    %c0_22 = arith.constant 0 : index
    %41 = vector.load %arg9[%c0_21, %c0_22] : memref<48x128xf32, #tpu.memory_space<vmem>>, vector<8x128xf32>
    tpu.vector_store %arg9[%c0_21, %c0_22], %40 {strides = array<i32>} : memref<48x128xf32, #tpu.memory_space<vmem>>, vector<8x128xf32>,
    %cst_23 = arith.constant 0.000000e+00 : f32
    %42 = vector.broadcast %cst_23 : f32 to vector<8x128xf32>
    %c40 = arith.constant 40 : index
    %c0_24 = arith.constant 0 : index
    %43 = vector.load %arg9[%c40, %c0_24] : memref<48x128xf32, #tpu.memory_space<vmem>>, vector<8x128xf32>
    tpu.vector_store %arg9[%c40, %c0_24], %42 {strides = array<i32>} : memref<48x128xf32, #tpu.memory_space<vmem>>, vector<8x128xf32>,
    %c8 = arith.constant 8 : index
    %c0_25 = arith.constant 0 : index
    %44 = vector.load %arg9[%c8, %c0_25] : memref<48x128xf32, #tpu.memory_space<vmem>>, vector<32x128xf32>
    tpu.vector_store %arg9[%c8, %c0_25], %39 {strides = array<i32>} : memref<48x128xf32, #tpu.memory_space<vmem>>, vector<32x128xf32>,
    %c7 = arith.constant 7 : index
    %c0_26 = arith.constant 0 : index
    %45 = vector.load %arg9[%c7, %c0_26] : memref<48x128xf32, #tpu.memory_space<vmem>>, vector<32x128xf32>
    %c0_27 = arith.constant 0 : index
    %c0_28 = arith.constant 0 : index
    %46 = vector.load %arg7[%c0_27, %c0_28] : memref<32x2xf32, #tpu.memory_space<vmem>>, vector<32x1xf32>
    %47 = vector.broadcast %46 : vector<32x1xf32> to vector<32x128xf32>
    %48 = arith.mulf %45, %47 : vector<32x128xf32>
    %c9 = arith.constant 9 : index
    %c0_29 = arith.constant 0 : index
    %49 = vector.load %arg9[%c9, %c0_29] : memref<48x128xf32, #tpu.memory_space<vmem>>, vector<32x128xf32>
    %c0_30 = arith.constant 0 : index
    %c1_31 = arith.constant 1 : index
    %50 = vector.load %arg7[%c0_30, %c1_31] : memref<32x2xf32, #tpu.memory_space<vmem>>, vector<32x1xf32>
    %51 = vector.broadcast %50 : vector<32x1xf32> to vector<32x128xf32>
    %52 = arith.mulf %49, %51 : vector<32x128xf32>
    %c0_32 = arith.constant 0 : index
    %c0_33 = arith.constant 0 : index
    %53 = vector.load %arg3[%c0_32, %c0_33] : memref<384x128xbf16, #tpu.memory_space<vmem>>, vector<128x128xbf16>
    %54 = arith.truncf %48 : vector<32x128xf32> to vector<32x128xbf16>
    %cst_34 = arith.constant dense<0.000000e+00> : vector<32x128xf32>
    %55 = tpu.matmul %54, %53, %cst_34 {dimension_numbers = #tpu.dot_dimension_numbers<[1], [0], [0], [1], [0, 0, 1, 1], [], []>} : vector<32x128xbf16>, vector<128x128xbf16>, vector<32x128xf32> -> vector<32x128xf32>
    %c128 = arith.constant 128 : index
    %c0_35 = arith.constant 0 : index
    %56 = vector.load %arg3[%c128, %c0_35] : memref<384x128xbf16, #tpu.memory_space<vmem>>, vector<128x128xbf16>
    %57 = arith.truncf %39 : vector<32x128xf32> to vector<32x128xbf16>
    %cst_36 = arith.constant dense<0.000000e+00> : vector<32x128xf32>
    %58 = tpu.matmul %57, %56, %cst_36 {dimension_numbers = #tpu.dot_dimension_numbers<[1], [0], [0], [1], [0, 0, 1, 1], [], []>} : vector<32x128xbf16>, vector<128x128xbf16>, vector<32x128xf32> -> vector<32x128xf32>
    %59 = arith.addf %55, %58 : vector<32x128xf32>
    %c256 = arith.constant 256 : index
    %c0_37 = arith.constant 0 : index
    %60 = vector.load %arg3[%c256, %c0_37] : memref<384x128xbf16, #tpu.memory_space<vmem>>, vector<128x128xbf16>
    %61 = arith.truncf %52 : vector<32x128xf32> to vector<32x128xbf16>
    %cst_38 = arith.constant dense<0.000000e+00> : vector<32x128xf32>
    %62 = tpu.matmul %61, %60, %cst_38 {dimension_numbers = #tpu.dot_dimension_numbers<[1], [0], [0], [1], [0, 0, 1, 1], [], []>} : vector<32x128xbf16>, vector<128x128xbf16>, vector<32x128xf32> -> vector<32x128xf32>
    %63 = arith.addf %59, %62 : vector<32x128xf32>
    %c4 = arith.constant 4 : index
    %c0_39 = arith.constant 0 : index
    %64 = vector.load %arg6[%c4, %c0_39] : memref<12x128xf32, #tpu.memory_space<vmem>>, vector<1x128xf32>
    %65 = vector.broadcast %64 : vector<1x128xf32> to vector<32x128xf32>
    %66 = arith.addf %63, %65 : vector<32x128xf32>
    %c5 = arith.constant 5 : index
    %c0_40 = arith.constant 0 : index
    %67 = vector.load %arg6[%c5, %c0_40] : memref<12x128xf32, #tpu.memory_space<vmem>>, vector<1x128xf32>
    %c6 = arith.constant 6 : index
    %c0_41 = arith.constant 0 : index
    %68 = vector.load %arg6[%c6, %c0_41] : memref<12x128xf32, #tpu.memory_space<vmem>>, vector<1x128xf32>
    %cst_42 = arith.constant dense<0.000000e+00> : vector<128xf32>
    %69 = vector.multi_reduction <add>, %66, %cst_42 [0] : vector<32x128xf32> to vector<128xf32>
    %70 = vector.shape_cast %69 : vector<128xf32> to vector<1x128xf32>
    %71 = arith.mulf %66, %66 : vector<32x128xf32>
    %cst_43 = arith.constant dense<0.000000e+00> : vector<128xf32>
    %72 = vector.multi_reduction <add>, %71, %cst_43 [0] : vector<32x128xf32> to vector<128xf32>
    %73 = vector.shape_cast %72 : vector<128xf32> to vector<1x128xf32>
    %c0_44 = arith.constant 0 : index
    %c0_45 = arith.constant 0 : index
    %74 = vector.load %arg5[%c0_44, %c0_45] : memref<128x128xf32, #tpu.memory_space<vmem>>, vector<128x128xf32>
    %cst_46 = arith.constant dense<0.000000e+00> : vector<1x128xf32>
    %75 = tpu.matmul %70, %74, %cst_46 {dimension_numbers = #tpu.dot_dimension_numbers<[1], [0], [0], [1], [0, 0, 1, 1], [], []>} : vector<1x128xf32>, vector<128x128xf32>, vector<1x128xf32> -> vector<1x128xf32>
    %cst_47 = arith.constant 0.001953125 : f32
    %76 = vector.broadcast %cst_47 : f32 to vector<1x128xf32>
    %77 = arith.mulf %75, %76 : vector<1x128xf32>
    %c0_48 = arith.constant 0 : index
    %c0_49 = arith.constant 0 : index
    %78 = vector.load %arg5[%c0_48, %c0_49] : memref<128x128xf32, #tpu.memory_space<vmem>>, vector<128x128xf32>
    %cst_50 = arith.constant dense<0.000000e+00> : vector<1x128xf32>
    %79 = tpu.matmul %73, %78, %cst_50 {dimension_numbers = #tpu.dot_dimension_numbers<[1], [0], [0], [1], [0, 0, 1, 1], [], []>} : vector<1x128xf32>, vector<128x128xf32>, vector<1x128xf32> -> vector<1x128xf32>
    %cst_51 = arith.constant 0.001953125 : f32
    %80 = vector.broadcast %cst_51 : f32 to vector<1x128xf32>
    %81 = arith.mulf %79, %80 : vector<1x128xf32>
    %82 = arith.mulf %77, %77 : vector<1x128xf32>
    %83 = arith.subf %81, %82 : vector<1x128xf32>
    %cst_52 = arith.constant 9.99999974E-6 : f32
    %84 = vector.broadcast %cst_52 : f32 to vector<1x128xf32>
    %85 = arith.addf %83, %84 : vector<1x128xf32>
    %86 = math.rsqrt %85 : vector<1x128xf32>
    %87 = arith.mulf %67, %86 : vector<1x128xf32>
    %88 = arith.mulf %77, %87 : vector<1x128xf32>
    %89 = arith.subf %68, %88 : vector<1x128xf32>
    %90 = vector.broadcast %87 : vector<1x128xf32> to vector<32x128xf32>
    %91 = arith.mulf %66, %90 : vector<32x128xf32>
    %92 = vector.broadcast %89 : vector<1x128xf32> to vector<32x128xf32>
    %93 = arith.addf %91, %92 : vector<32x128xf32>
    %c7_53 = arith.constant 7 : index
    %c0_54 = arith.constant 0 : index
    %94 = vector.load %arg6[%c7_53, %c0_54] : memref<12x128xf32, #tpu.memory_space<vmem>>, vector<1x128xf32>
    %cst_55 = arith.constant 0.000000e+00 : f32
    %95 = vector.broadcast %cst_55 : f32 to vector<32x128xf32>
    %96 = arith.cmpf oge, %93, %95 : vector<32x128xf32>
    %97 = vector.broadcast %94 : vector<1x128xf32> to vector<32x128xf32>
    %98 = arith.mulf %97, %93 : vector<32x128xf32>
    %99 = arith.select %96, %93, %98 : vector<32x128xi1>, vector<32x128xf32>
    %c0_56 = arith.constant 0 : index
    %c0_57 = arith.constant 0 : index
    %100 = vector.load %arg4[%c0_56, %c0_57] : memref<128x128xbf16, #tpu.memory_space<vmem>>, vector<128x128xbf16>
    %101 = arith.truncf %99 : vector<32x128xf32> to vector<32x128xbf16>
    %cst_58 = arith.constant dense<0.000000e+00> : vector<32x128xf32>
    %102 = tpu.matmul %101, %100, %cst_58 {dimension_numbers = #tpu.dot_dimension_numbers<[1], [0], [0], [1], [0, 0, 1, 1], [], []>} : vector<32x128xbf16>, vector<128x128xbf16>, vector<32x128xf32> -> vector<32x128xf32>
    %c8_59 = arith.constant 8 : index
    %c0_60 = arith.constant 0 : index
    %103 = vector.load %arg6[%c8_59, %c0_60] : memref<12x128xf32, #tpu.memory_space<vmem>>, vector<1x128xf32>
    %104 = vector.broadcast %103 : vector<1x128xf32> to vector<32x128xf32>
    %105 = arith.addf %102, %104 : vector<32x128xf32>
    %c9_61 = arith.constant 9 : index
    %c0_62 = arith.constant 0 : index
    %106 = vector.load %arg6[%c9_61, %c0_62] : memref<12x128xf32, #tpu.memory_space<vmem>>, vector<1x128xf32>
    %c10 = arith.constant 10 : index
    %c0_63 = arith.constant 0 : index
    %107 = vector.load %arg6[%c10, %c0_63] : memref<12x128xf32, #tpu.memory_space<vmem>>, vector<1x128xf32>
    %cst_64 = arith.constant dense<0.000000e+00> : vector<128xf32>
    %108 = vector.multi_reduction <add>, %105, %cst_64 [0] : vector<32x128xf32> to vector<128xf32>
    %109 = vector.shape_cast %108 : vector<128xf32> to vector<1x128xf32>
    %110 = arith.mulf %105, %105 : vector<32x128xf32>
    %cst_65 = arith.constant dense<0.000000e+00> : vector<128xf32>
    %111 = vector.multi_reduction <add>, %110, %cst_65 [0] : vector<32x128xf32> to vector<128xf32>
    %112 = vector.shape_cast %111 : vector<128xf32> to vector<1x128xf32>
    %c0_66 = arith.constant 0 : index
    %c0_67 = arith.constant 0 : index
    %113 = vector.load %arg5[%c0_66, %c0_67] : memref<128x128xf32, #tpu.memory_space<vmem>>, vector<128x128xf32>
    %cst_68 = arith.constant dense<0.000000e+00> : vector<1x128xf32>
    %114 = tpu.matmul %109, %113, %cst_68 {dimension_numbers = #tpu.dot_dimension_numbers<[1], [0], [0], [1], [0, 0, 1, 1], [], []>} : vector<1x128xf32>, vector<128x128xf32>, vector<1x128xf32> -> vector<1x128xf32>
    %cst_69 = arith.constant 0.001953125 : f32
    %115 = vector.broadcast %cst_69 : f32 to vector<1x128xf32>
    %116 = arith.mulf %114, %115 : vector<1x128xf32>
    %c0_70 = arith.constant 0 : index
    %c0_71 = arith.constant 0 : index
    %117 = vector.load %arg5[%c0_70, %c0_71] : memref<128x128xf32, #tpu.memory_space<vmem>>, vector<128x128xf32>
    %cst_72 = arith.constant dense<0.000000e+00> : vector<1x128xf32>
    %118 = tpu.matmul %112, %117, %cst_72 {dimension_numbers = #tpu.dot_dimension_numbers<[1], [0], [0], [1], [0, 0, 1, 1], [], []>} : vector<1x128xf32>, vector<128x128xf32>, vector<1x128xf32> -> vector<1x128xf32>
    %cst_73 = arith.constant 0.001953125 : f32
    %119 = vector.broadcast %cst_73 : f32 to vector<1x128xf32>
    %120 = arith.mulf %118, %119 : vector<1x128xf32>
    %121 = arith.mulf %116, %116 : vector<1x128xf32>
    %122 = arith.subf %120, %121 : vector<1x128xf32>
    %cst_74 = arith.constant 9.99999974E-6 : f32
    %123 = vector.broadcast %cst_74 : f32 to vector<1x128xf32>
    %124 = arith.addf %122, %123 : vector<1x128xf32>
    %125 = math.rsqrt %124 : vector<1x128xf32>
    %126 = arith.mulf %106, %125 : vector<1x128xf32>
    %127 = arith.mulf %116, %126 : vector<1x128xf32>
    %128 = arith.subf %107, %127 : vector<1x128xf32>
    %129 = vector.broadcast %126 : vector<1x128xf32> to vector<32x128xf32>
    %130 = arith.mulf %105, %129 : vector<32x128xf32>
    %131 = vector.broadcast %128 : vector<1x128xf32> to vector<32x128xf32>
    %132 = arith.addf %130, %131 : vector<32x128xf32>
    %133 = arith.addf %132, %0 : vector<32x128xf32>
    %c11 = arith.constant 11 : index
    %c0_75 = arith.constant 0 : index
    %134 = vector.load %arg6[%c11, %c0_75] : memref<12x128xf32, #tpu.memory_space<vmem>>, vector<1x128xf32>
    %cst_76 = arith.constant 0.000000e+00 : f32
    %135 = vector.broadcast %cst_76 : f32 to vector<32x128xf32>
    %136 = arith.cmpf oge, %133, %135 : vector<32x128xf32>
    %137 = vector.broadcast %134 : vector<1x128xf32> to vector<32x128xf32>
    %138 = arith.mulf %137, %133 : vector<32x128xf32>
    %139 = arith.select %136, %133, %138 : vector<32x128xi1>, vector<32x128xf32>
    %c0_77 = arith.constant 0 : index
    %c0_78 = arith.constant 0 : index
    %140 = vector.load %arg8[%c0_77, %c0_78] : memref<32x128xf32, #tpu.memory_space<vmem>>, vector<32x128xf32>
    tpu.vector_store %arg8[%c0_77, %c0_78], %139 {strides = array<i32>} : memref<32x128xf32, #tpu.memory_space<vmem>>, vector<32x128xf32>,
    return
  }
  func.func @transform_0(%arg0: i32) -> (i32, i32) {
    %c0_i32 = arith.constant 0 : i32
    %c0_i32_0 = arith.constant 0 : i32
    %c0_i32_1 = arith.constant 0 : i32
    return %c0_i32, %c0_i32_0 : i32, i32
  }
  func.func @transform_1(%arg0: i32) -> (i32, i32) {
    %c0_i32 = arith.constant 0 : i32
    %c0_i32_0 = arith.constant 0 : i32
    %c0_i32_1 = arith.constant 0 : i32
    return %c0_i32, %c0_i32_0 : i32, i32
  }
  func.func @transform_2(%arg0: i32) -> (i32, i32) {
    %c0_i32 = arith.constant 0 : i32
    %c0_i32_0 = arith.constant 0 : i32
    %c0_i32_1 = arith.constant 0 : i32
    return %c0_i32, %c0_i32_0 : i32, i32
  }
  func.func @transform_3(%arg0: i32) -> (i32, i32) {
    %c0_i32 = arith.constant 0 : i32
    %c0_i32_0 = arith.constant 0 : i32
    %c0_i32_1 = arith.constant 0 : i32
    return %c0_i32, %c0_i32_0 : i32, i32
  }
  func.func @transform_4(%arg0: i32) -> (i32, i32) {
    %c0_i32 = arith.constant 0 : i32
    %c0_i32_0 = arith.constant 0 : i32
    %c0_i32_1 = arith.constant 0 : i32
    return %c0_i32, %c0_i32_0 : i32, i32
  }
  func.func @transform_5(%arg0: i32) -> (i32, i32) {
    %c0_i32 = arith.constant 0 : i32
    %c0_i32_0 = arith.constant 0 : i32
    %c0_i32_1 = arith.constant 0 : i32
    return %c0_i32, %c0_i32_0 : i32, i32
  }
  func.func @transform_6(%arg0: i32) -> (i32, i32) {
    %c0_i32 = arith.constant 0 : i32
    %c0_i32_0 = arith.constant 0 : i32
    %c0_i32_1 = arith.constant 0 : i32
    return %c0_i32, %c0_i32_0 : i32, i32
  }
  func.func @transform_7(%arg0: i32) -> (i32, i32) {
    %c0_i32 = arith.constant 0 : i32
    %c0_i32_0 = arith.constant 0 : i32
    %c0_i32_1 = arith.constant 0 : i32
    return %c0_i32, %c0_i32_0 : i32, i32
  }
}

</mosaic_0001>

<bundles_post_ra>
// kernel: tpu_custom_call.1
= control target key start
LH: loop header
LB: loop body
LE: loop exit
PB: predicated region body
PF: predicated region fallthrough
CT: control target
= control target key end

     0   :  { %12 = vsyncpa [#allocation4], 0  ;;  %s2568_s0 = inlined_call_operand.vmem [shape: f32[32,128], index: 0, kind: input, shape index: {}]   ;;  %s2569_s1 = inlined_call_operand.hbm [shape: bf16[128,128], index: 1, kind: input, shape index: {}]   ;;  %s2570_s2 = inlined_call_operand.hbm [shape: bf16[384,128], index: 2, kind: input, shape index: {}]   ;;  %s2571_s3 = inlined_call_operand.hbm [shape: bf16[128,128], index: 3, kind: input, shape index: {}]   ;;  %s2572_s4 = inlined_call_operand.hbm [shape: f32[128,128], index: 4, kind: input, shape index: {}]   ;;  %s2573_s5 = inlined_call_operand.hbm [shape: f32[12,128], index: 5, kind: input, shape index: {}]   ;;  %s2574_s6 = inlined_call_operand.vmem [shape: f32[32,2], index: 6, kind: input, shape index: {}]   ;;  %s2575_s7 = inlined_call_operand.hbm [shape: f32[32,128], index: 7, kind: output, shape index: {}]  }
   0x1   :  { %13 = vsyncpa [#allocation7], 0 }
   0x2   :  { %14 = vsyncpa [#allocation10], 0 }
   0x3   :  { %15 = vsyncpa [#allocation5], 0  ;;  %s2144_s24 = smov [#allocation6]   ;;  %s2145_s26 = smov [#allocation9]  }
   0x4   :  { %s35_s25 = sshll.u32 %s2144_s24, 4  ;;  %s59_s27 = sshll.u32 %s2145_s26, 4  ;;  %s36_s25 = int_to_ptr.vmem [resolvable:$true] %s35_s25  ;;  %s60_s27 = int_to_ptr.vmem [resolvable:$true] %s59_s27 }
   0x5   :  { %s2024_s28 = scalar_lea.vmem %s36_s25, 3072  ;;  %p2029_p1 = scmp.lt.s32.totalorder %s36_s25, %s36_s25 }
   0x6   :  { %p2025_p0 = scmp.ne.s32.totalorder %s36_s25, %s2024_s28  ;;  %p2030_p2 = scmp.lt.s32.totalorder %s2024_s28, %s2024_s28 }
   0x8   :  { %p2031_p3 = por %p2030_p2, %p2029_p1 }
   0xa   :  { %p2032_p4 = pnand %p2031_p3, %p2025_p0 }
   0xc   :  { %2035 = shalt.err (!%p2032_p4)
}
   0xd   :  { %s2146_s29 = smov 64   ;;  %s2147_s30 = smov 4  }
   0xe   :  { %41 = dma.hbm_to_vmem [thread:$0]  %s2570_s2, 3072, %s36_s25, [#allocation7], %s2146_s29, %s2146_s29, %s2147_s30  }
   0xf   :  { %s2044_s10 = scalar_lea.vmem %s60_s27, 2048  ;;  %p2049_p6 = scmp.lt.s32.totalorder %s60_s27, %s60_s27 }
  0x10   :  { %p2045_p5 = scmp.ne.s32.totalorder %s60_s27, %s2044_s10  ;;  %p2050_p7 = scmp.lt.s32.totalorder %s2044_s10, %s2044_s10 }
  0x12   :  { %p2051_p8 = por %p2050_p7, %p2049_p6 }
  0x14   :  { %p2052_p9 = pnand %p2051_p8, %p2045_p5 }
  0x16   :  { %2055 = shalt.err (!%p2052_p9)
}
  0x17   :  { %s2148_s11 = smov 128   ;;  %s2149_s12 = smov 8  }
  0x18   :  { %65 = dma.hbm_to_vmem [thread:$0]  %s2572_s4, 2048, %s60_s27, [#allocation10], %s2148_s11, %s2148_s11, %s2149_s12  }
  0x19   :  { %s2150_s15 = smov [#allocation3]   ;;  %s2151_s17 = smov [#allocation8]  }
  0x1a   :  { %s23_s16 = sshll.u32 %s2150_s15, 4  ;;  %s47_s2 = sshll.u32 %s2151_s17, 4  ;;  %s24_s16 = int_to_ptr.vmem [resolvable:$true] %s23_s16  ;;  %s48_s2 = int_to_ptr.vmem [resolvable:$true] %s47_s2 }
  0x1b   :  { %s2064_s18 = scalar_lea.vmem %s24_s16, 1024  ;;  %p2069_p11 = scmp.lt.s32.totalorder %s24_s16, %s24_s16 }
  0x1c   :  { %p2065_p10 = scmp.ne.s32.totalorder %s24_s16, %s2064_s18  ;;  %p2070_p12 = scmp.lt.s32.totalorder %s2064_s18, %s2064_s18 }
  0x1e   :  { %p2071_p13 = por %p2070_p12, %p2069_p11 }
  0x20   :  { %p2072_p0 = pnand %p2071_p13, %p2065_p10 }
  0x22   :  { %2075 = shalt.err (!%p2072_p0)
}
  0x23   :  { %29 = dma.hbm_to_vmem [thread:$0]  %s2569_s1, 1024, %s24_s16, [#allocation4], %s2146_s29, %s2146_s29, %s2147_s30  }
  0x24   :  { %s2084_s4 = scalar_lea.vmem %s48_s2, 1024  ;;  %p2089_p2 = scmp.lt.s32.totalorder %s48_s2, %s48_s2 }
  0x25   :  { %p2085_p1 = scmp.ne.s32.totalorder %s48_s2, %s2084_s4  ;;  %p2090_p3 = scmp.lt.s32.totalorder %s2084_s4, %s2084_s4 }
  0x27   :  { %p2091_p4 = por %p2090_p3, %p2089_p2 }
  0x29   :  { %p2092_p5 = pnand %p2091_p4, %p2085_p1 }
  0x2b   :  { %2095 = shalt.err (!%p2092_p5)
}
  0x2c   :  { %53 = dma.hbm_to_vmem [thread:$0]  %s2571_s3, 1024, %s48_s2, [#allocation7], %s2146_s29, %s2146_s29, %s2147_s30  }
  0x2d   :  { %s2152_s23 = smov [#allocation11]  }
  0x2e   :  { %s71_s24 = sshll.u32 %s2152_s23, 4  ;;  %s72_s24 = int_to_ptr.vmem [resolvable:$true] %s71_s24 }
  0x2f   :  { %s2104_s25 = scalar_lea.vmem %s72_s24, 256  ;;  %p2109_p7 = scmp.lt.s32.totalorder %s72_s24, %s72_s24 }
  0x30   :  { %p2105_p6 = scmp.ne.s32.totalorder %s72_s24, %s2104_s25  ;;  %p2110_p8 = scmp.lt.s32.totalorder %s2104_s25, %s2104_s25 }
  0x32   :  { %p2111_p9 = por %p2110_p8, %p2109_p7 }
  0x34   :  { %p2112_p10 = pnand %p2111_p9, %p2105_p6 }
  0x36   :  { %2115 = shalt.err (!%p2112_p10)
}
  0x37   :  { %77 = dma.hbm_to_vmem [thread:$0]  %s2573_s5, 256, %s72_s24, [#allocation10], %s2148_s11, %s2148_s11, %s2149_s12  }
  0x38   :  { %2136 = dma.done.wait [#allocation4], 1024  }
  0x39   :  { %2137 = vsyncadd [#allocation4], 4294966272 }
  0x3a   :  { %2138 = dma.done.wait [#allocation7], 4096  }
  0x3b   :  { %2139 = vsyncadd [#allocation7], 4294963200 }
  0x3c   :  { %2140 = dma.done.wait [#allocation10], 2304  }
  0x3d   :  { %2141 = vsyncadd [#allocation10], 4294964992  ;;  %v2153_v0 = vmov 0.0   ;;  %v1963_v1 = vld [vmem:[#allocation3 + $0x38] sm:$0xff]   ;;  %v1964_v2 = vld [vmem:[#allocation3 + $0x30] sm:$0xff]   ;;  %vm2154_vm0 = vmmov 0  }
  0x3e   :  { %1655 = vmatprep.subr.mxu1 %v2153_v0  ;;  %442 = vst [vmem:[#allocation2] sm:$0xff] %v2153_v0  ;;  %443 = vst [vmem:[#allocation2 + $0x28] sm:$0xff] %v2153_v0  ;;  %1635 = vmatprep.subr.bf16.mxu0 %v1963_v1  ;;  %v1965_v3 = vld [vmem:[#allocation3 + $0x28] sm:$0xff]   ;;  %v1966_v4 = vld [vmem:[#allocation3 + $0x20] sm:$0xff]   ;;  %v2155_v33 = vmov 0   ;;  %v2156_v36 = vmov 1  }
  0x3f   :  { %1636 = vmatpush3.bf16.msra.mxu0 %v1963_v1  ;;  %v96_v5 = vld [vmem:[%s2568_s0] sm:$0xff]  ;;  %v97_v6 = vld [vmem:[%s2568_s0 + $0x8] sm:$0xff]  ;;  %v1969_v12 = vld [vmem:[#allocation3 + $0x8] sm:$0xff]   ;;  %1687 = vmatprep.mubr.msk.f32.mxu1 %vm2154_vm0, %v2153_v0  ;;  %s2157_s25 = smov [#allocation12]  }
  0x40   :  { %1637 = vmatprep.subr.bf16.mxu0 %v1964_v2  ;;  %v116_v7 = vpack.c.bf16 %v97_v6, %v96_v5  ;;  %v2237_v8 = vld [vmem:[#allocation9 + $0x78] sm:$0xff]  ;;  %v2239_v9 = vld [vmem:[#allocation9 + $0x70] sm:$0xff]  ;;  %v1970_v13 = vld [vmem:[#allocation3] sm:$0xff]   ;;  %1960 = vset.pattern.permute.xlu1 %v2155_v33  ;;  %s1423_s1 = sshll.u32 %s2157_s25, 4  ;;  %s1424_s1 = int_to_ptr.vmem [resolvable:$true] %s1423_s1 }
  0x41   :  { %v1967_v10 = vld [vmem:[#allocation3 + $0x18] sm:$0xff]   ;;  %1656 = vmatpush3.msra.mxu1 %v2237_v8  ;;  %v1968_v11 = vld [vmem:[#allocation3 + $0x10] sm:$0xff]   ;;  %v98_v14 = vld [vmem:[%s2568_s0 + $0x10] sm:$0xff]  ;;  %1959 = vset.pattern.permute.xlu0 %v2155_v33  ;;  %p2121_p12 = scmp.lt.s32.totalorder %s1424_s1, %s1424_s1 }
  0x42   :  { %1651 = vmatprep.mubr.bf16.mxu0 %v116_v7  ;;  %1657 = vmatprep.subr.mxu1 %v2153_v0  ;;  %v99_v15 = vld [vmem:[%s2568_s0 + $0x18] sm:$0xff]  ;;  %v2261_v18 = vld [vmem:[#allocation9 + $0x60] sm:$0xff]  ;;  %v2267_v19 = vld [vmem:[#allocation9 + $0x58] sm:$0xff] }
  0x43   :  { %1638 = vmatpush3.bf16.msra.mxu0 %v1964_v2  ;;  %1658 = vmatpush3.msra.mxu1 %v2239_v9  ;;  %v117_v16 = vpack.c.bf16 %v99_v15, %v98_v14  ;;  %v2256_v17 = vld [vmem:[#allocation9 + $0x68] sm:$0xff]  ;;  %v2273_v20 = vld [vmem:[#allocation9 + $0x50] sm:$0xff]  ;;  %v2285_v22 = vld [vmem:[#allocation9 + $0x40] sm:$0xff] }
  0x44   :  { %1639 = vmatprep.subr.bf16.mxu0 %v1965_v3  ;;  %1659 = vmatprep.subr.mxu1 %v2153_v0  ;;  %v2279_v21 = vld [vmem:[#allocation9 + $0x48] sm:$0xff]  ;;  %v2291_v23 = vld [vmem:[#allocation9 + $0x38] sm:$0xff]  ;;  %v2297_v24 = vld [vmem:[#allocation9 + $0x30] sm:$0xff] }
  0x45   :  { %1660 = vmatpush3.msra.mxu1 %v2256_v17  ;;  %v2303_v25 = vld [vmem:[#allocation9 + $0x28] sm:$0xff]  ;;  %v2309_v26 = vld [vmem:[#allocation9 + $0x20] sm:$0xff]  ;;  %v2312_v27 = vld [vmem:[#allocation9 + $0x18] sm:$0xff] }
  0x46   :  { %1661 = vmatprep.subr.mxu1 %v2153_v0  ;;  %v2318_v28 = vld [vmem:[#allocation9 + $0x10] sm:$0xff]  ;;  %v2324_v29 = vld [vmem:[#allocation9 + $0x8] sm:$0xff]  ;;  %v2330_v30 = vld [vmem:[#allocation9] sm:$0xff] }
  0x47   :  { %1640 = vmatpush3.bf16.msra.mxu0 %v1965_v3  ;;  %1662 = vmatpush3.msra.mxu1 %v2261_v18  ;;  %v454_v31 = vld [vmem:[%s2574_s6 + $0x10] sm:$0xff]  ;;  %v452_v32 = vld [vmem:[%s2574_s6] sm:$0xff]  ;;  %v455_v34 = vld [vmem:[%s2574_s6 + $0x18] sm:$0xff] }
  0x48   :  { %1641 = vmatprep.subr.bf16.mxu0 %v1966_v4  ;;  %1663 = vmatprep.subr.mxu1 %v2153_v0  ;;  %v453_v35 = vld [vmem:[%s2574_s6 + $0x8] sm:$0xff]  ;;  %v1437_v39 = vld [vmem:[#allocation11] ss:$0 sm:$0xff]  ;;  %v1972_v6 = vld [vmem:[#allocation6 + $0x70] sm:$0xff]  }
  0x49   :  { %1664 = vmatpush3.msra.mxu1 %v2267_v19  ;;  %468 = vperm.xlu1 %1960, %v454_v31   ;;  %v1971_v5 = vld [vmem:[#allocation6 + $0x78] sm:$0xff]   ;;  %v1973_v7 = vld [vmem:[#allocation6 + $0x68] sm:$0xff]   ;;  %v1979_v15 = vld [vmem:[#allocation6 + $0x50] sm:$0xff]  }
  0x4a   :  { %1665 = vmatprep.subr.mxu1 %v2153_v0  ;;  %458 = vperm.xlu0 %1959, %v452_v32   ;;  %v1978_v14 = vld [vmem:[#allocation6 + $0x28] sm:$0xff]   ;;  %v1983_v33 = vld [vmem:[#allocation6 + $0x40] sm:$0xff]  }
  0x4b   :  { %1642 = vmatpush3.bf16.msra.mxu0 %v1966_v4  ;;  %1666 = vmatpush3.msra.mxu1 %v2273_v20 }
  0x4c   :  { %1643 = vmatprep.subr.bf16.mxu0 %v1967_v10  ;;  %1667 = vmatprep.subr.mxu1 %v2153_v0 }
  0x4d   :  { %1668 = vmatpush3.msra.mxu1 %v2279_v21  ;;  %473 = vperm.xlu1 %1960, %v455_v34  }
  0x4e   :  { %1669 = vmatprep.subr.mxu1 %v2153_v0  ;;  %463 = vperm.xlu0 %1959, %v453_v35  }
  0x4f   :  { %1644 = vmatpush3.bf16.msra.mxu0 %v1967_v10  ;;  %1670 = vmatpush3.msra.mxu1 %v2285_v22  ;;  %v1974_v10 = vld [vmem:[#allocation6 + $0x38] sm:$0xff]  }
  0x50   :  { %1645 = vmatprep.subr.bf16.mxu0 %v1968_v11  ;;  %1671 = vmatprep.subr.mxu1 %v2153_v0 }
  0x51   :  { %1672 = vmatpush3.msra.mxu1 %v2291_v23  ;;  %1962 = vset.pattern.permute.xlu1 %v2156_v36 }
  0x52   :  { %1673 = vmatprep.subr.mxu1 %v2153_v0  ;;  %1961 = vset.pattern.permute.xlu0 %v2156_v36  ;;  %v1986_v36 = vld [vmem:[#allocation6 + $0x8] sm:$0xff]  }
  0x53   :  { %1646 = vmatpush3.bf16.msra.mxu0 %v1968_v11  ;;  %1674 = vmatpush3.msra.mxu1 %v2297_v24  ;;  %v1975_v11 = vld [vmem:[#allocation6 + $0x60] sm:$0xff]  }
  0x54   :  { %1647 = vmatprep.subr.bf16.mxu0 %v1969_v12  ;;  %1675 = vmatprep.subr.mxu1 %v2153_v0 }
  0x55   :  { %1676 = vmatpush3.msra.mxu1 %v2303_v25  ;;  %489 = vperm.xlu1 %1962, %v453_v35   ;;  %v2374_v35 = vld [vmem:[#allocation6 + $0xb8] sm:$0xff]  }
  0x56   :  { %1677 = vmatprep.subr.mxu1 %v2153_v0  ;;  %485 = vperm.xlu0 %1961, %v452_v32   ;;  %v1982_v32 = vld [vmem:[#allocation6 + $0x18] sm:$0xff]  }
  0x57   :  { %1648 = vmatpush3.bf16.msra.mxu0 %v1969_v12  ;;  %1678 = vmatpush3.msra.mxu1 %v2309_v26  ;;  %v1976_v12 = vld [vmem:[#allocation6 + $0x30] sm:$0xff]  }
  0x58   :  { %1649 = vmatprep.subr.bf16.mxu0 %v1970_v13  ;;  %1679 = vmatprep.subr.mxu1 %v2153_v0 }
  0x59   :  { %1680 = vmatpush3.msra.mxu1 %v2312_v27  ;;  %493 = vperm.xlu1 %1962, %v454_v31   ;;  %v1981_v31 = vld [vmem:[#allocation6 + $0x48] sm:$0xff]  }
  0x5a   :  { %1681 = vmatprep.subr.mxu1 %v2153_v0  ;;  %497 = vperm.xlu0 %1961, %v455_v34   ;;  %v1984_v34 = vld [vmem:[#allocation6 + $0x10] sm:$0xff]  }
  0x5b   :  { %1650 = vmatpush3.bf16.msra.mxu0 %v1970_v13  ;;  %1682 = vmatpush3.msra.mxu1 %v2318_v28  ;;  %v1977_v13 = vld [vmem:[#allocation6 + $0x58] sm:$0xff]  }
  0x5c   :  { %1690 = vmatprep.subr.mxu0 %v2153_v0  ;;  %1683 = vmatprep.subr.mxu1 %v2153_v0 }
  0x5d   :  { %1684 = vmatpush3.msra.mxu1 %v2324_v29 }
  0x5e   :  { %1652 = vmatmul.mubr.bf16.vlgmr.msra.gmra.mxu0 %v117_v16  ;;  %1685 = vmatprep.subr.mxu1 %v2153_v0  ;;  %v1980_v16 = vld [vmem:[#allocation6 + $0x20] sm:$0xff]  }
  0x5f   :  { %1691 = vmatpush3.msra.mxu0 %v2237_v8  ;;  %1686 = vmatpush3.msra.mxu1 %v2330_v30 }
  0x60   :  { %1692 = vmatprep.subr.mxu0 %v2153_v0  ;;  %1722 = vmatprep.mubr.msk.f32.mxu0 %vm2154_vm0, %v2153_v0 }
  0x61   :  { %1693 = vmatpush3.msra.mxu0 %v2239_v9  ;;  %1725 = vmatprep.subr.bf16.mxu1 %v1971_v5 }
  0x62   :  { %1694 = vmatprep.subr.mxu0 %v2153_v0 }
  0x63   :  { %1695 = vmatpush3.msra.mxu0 %v2256_v17 }
  0x64   :  { %1696 = vmatprep.subr.mxu0 %v2153_v0 }
  0x65   :  { %1697 = vmatpush3.msra.mxu0 %v2261_v18 }
  0x66   :  { %1698 = vmatprep.subr.mxu0 %v2153_v0 }
  0x67   :  { %1699 = vmatpush3.msra.mxu0 %v2267_v19 }
  0x68   :  { %1700 = vmatprep.subr.mxu0 %v2153_v0 }
  0x69   :  { %1701 = vmatpush3.msra.mxu0 %v2273_v20 }
  0x6a   :  { %1702 = vmatprep.subr.mxu0 %v2153_v0 }
  0x6b   :  { %1703 = vmatpush3.msra.mxu0 %v2279_v21 }
  0x6c   :  { %1704 = vmatprep.subr.mxu0 %v2153_v0 }
  0x6d   :  { %1705 = vmatpush3.msra.mxu0 %v2285_v22 }
  0x6e   :  { %1706 = vmatprep.subr.mxu0 %v2153_v0 }
  0x6f   :  { %1707 = vmatpush3.msra.mxu0 %v2291_v23 }
  0x70   :  { %1708 = vmatprep.subr.mxu0 %v2153_v0 }
  0x71   :  { %1709 = vmatpush3.msra.mxu0 %v2297_v24 }
  0x72   :  { %1710 = vmatprep.subr.mxu0 %v2153_v0 }
  0x73   :  { %1711 = vmatpush3.msra.mxu0 %v2303_v25 }
  0x74   :  { %1712 = vmatprep.subr.mxu0 %v2153_v0 }
  0x75   :  { %1713 = vmatpush3.msra.mxu0 %v2309_v26 }
  0x76   :  { %1714 = vmatprep.subr.mxu0 %v2153_v0 }
  0x77   :  { %1715 = vmatpush3.msra.mxu0 %v2312_v27 }
  0x78   :  { %1716 = vmatprep.subr.mxu0 %v2153_v0 }
  0x79   :  { %1717 = vmatpush3.msra.mxu0 %v2318_v28 }
  0x7a   :  { %1718 = vmatprep.subr.mxu0 %v2153_v0 }
  0x7b   :  { %1719 = vmatpush3.msra.mxu0 %v2324_v29 }
  0x7c   :  { %1720 = vmatprep.subr.mxu0 %v2153_v0 }
  0x7d   :  { %1721 = vmatpush3.msra.mxu0 %v2330_v30 }
  0x7e   :  { %1745 = vmatprep.subr.bf16.mxu0 %v1974_v10 }
 0x11e   :  { %v1653_v37 = vpop.f32.mrf.mxu0 }
 0x11f   :  { %v2356_v43 = vadd.f32 %v1653_v37, %v1437_v39  ;;  %v1988_v37 = vld [vmem:[#allocation6] sm:$0xff]  }
 0x120   :  { %v205_v38 = vpop.f32.mrf.mxu0 }
 0x121   :  { %v2354_v41 = vadd.f32 %v1437_v39, %v205_v38  ;;  %v233_v49 = vmul.f32 %v2356_v43, %v2356_v43 }
 0x122   :  { %v1654_v40 = vpop.f32.mrf.mxu0 }
 0x123   :  { %v231_v45 = vmul.f32 %v2354_v41, %v2354_v41  ;;  %v2362_v46 = vadd.f32 %v1654_v40, %v1437_v39 }
 0x124   :  { %v208_v42 = vpop.f32.mrf.mxu0 }
 0x125   :  { %v2358_v44 = vadd.f32 %v1437_v39, %v208_v42  ;;  %v234_v52 = vmul.f32 %v2362_v46, %v2362_v46 }
 0x127   :  { %v222_v47 = vadd.f32 %v2358_v44, %v2354_v41  ;;  %v232_v48 = vmul.f32 %v2358_v44, %v2358_v44 }
 0x129   :  { %v223_v50 = vadd.f32 %v222_v47, %v2356_v43  ;;  %v235_v51 = vadd.f32 %v232_v48, %v231_v45 }
 0x12b   :  { %v224_v53 = vadd.f32 %v223_v50, %v2362_v46  ;;  %v236_v54 = vadd.f32 %v235_v51, %v233_v49  ;;  %v409_v51 = vlaneseq }
 0x12d   :  { %v237_v55 = vadd.f32 %v236_v54, %v234_v52  ;;  %v225_v56 = vrot.slane %v224_v53, 4  ;;  %v410_v52 = vshrl.u32 %v409_v51, 7 }
 0x12f   :  { %v238_v57 = vrot.slane %v237_v55, 4  ;;  %v226_v58 = vadd.f32 %v225_v56, %v224_v53  ;;  %v220_v53 = vld [vmem:[#allocation11 + $0x1] sm:$0x1]  ;;  %v2378_v54 = vsub.s32 0, %v410_v52 }
 0x131   :  { %v227_v59 = vrot.slane %v226_v58, 2  ;;  %v239_v60 = vadd.f32 %v238_v57, %v237_v55  ;;  %v221_v57 = vld [vmem:[#allocation11 + $0x2] sm:$0x1] }
 0x133   :  { %v228_v61 = vadd.f32 %v227_v59, %v226_v58  ;;  %v240_v62 = vrot.slane %v239_v60, 2 }
 0x135   :  { %v229_v63 = vrot.slane %v228_v61, 1  ;;  %v241_v1 = vadd.f32 %v240_v62, %v239_v60 }
 0x137   :  { %v230_v2 = vadd.f32 %v229_v63, %v228_v61  ;;  %v242_v3 = vrot.slane %v241_v1, 1 }
 0x139   :  { %1688 = vmatmul.mubr.f32.vlgmr.msra.gmra.mxu1 %v230_v2  ;;  %v243_v4 = vadd.f32 %v242_v3, %v241_v1 }
 0x13a   :  { %1726 = vmatpush3.bf16.msra.mxu1 %v1971_v5 }
 0x13b   :  { %1723 = vmatmul.mubr.f32.vlgmr.msra.gmra.mxu0 %v243_v4  ;;  %1727 = vmatprep.subr.bf16.mxu1 %v1972_v6 }
 0x13c   :  { %1746 = vmatpush3.bf16.msra.mxu0 %v1974_v10  ;;  %v469_v10 = vpop.permute.xlu1 %468 }
 0x13d   :  { %1747 = vmatprep.subr.bf16.mxu0 %v1976_v12 }
 0x13e   :  { %1728 = vmatpush3.bf16.msra.mxu1 %v1972_v6 }
 0x13f   :  { %1729 = vmatprep.subr.bf16.mxu1 %v1973_v7 }
 0x140   :  { %1748 = vmatpush3.bf16.msra.mxu0 %v1976_v12 }
 0x141   :  { %1749 = vmatprep.subr.bf16.mxu0 %v1978_v14 }
 0x142   :  { %1730 = vmatpush3.bf16.msra.mxu1 %v1973_v7  ;;  %v1446_v7 = vld [vmem:[#allocation11 + $0x3] ss:$0 sm:$0xff] }
 0x143   :  { %1731 = vmatprep.subr.bf16.mxu1 %v1975_v11 }
 0x144   :  { %1750 = vmatpush3.bf16.msra.mxu0 %v1978_v14 }
 0x145   :  { %1751 = vmatprep.subr.bf16.mxu0 %v1980_v16 }
 0x146   :  { %1732 = vmatpush3.bf16.msra.mxu1 %v1975_v11  ;;  %v459_v11 = vpop.permute.xlu0 %458 }
 0x147   :  { %1733 = vmatprep.subr.bf16.mxu1 %v1977_v13 }
 0x148   :  { %1752 = vmatpush3.bf16.msra.mxu0 %v1980_v16 }
 0x149   :  { %1753 = vmatprep.subr.bf16.mxu0 %v1982_v32 }
 0x14a   :  { %1734 = vmatpush3.bf16.msra.mxu1 %v1977_v13 }
 0x14b   :  { %1735 = vmatprep.subr.bf16.mxu1 %v1979_v15 }
 0x14c   :  { %1754 = vmatpush3.bf16.msra.mxu0 %v1982_v32  ;;  %v1987_v32 = vld [vmem:[#allocation6 + $0xb0] sm:$0xff]  }
 0x14d   :  { %1755 = vmatprep.subr.bf16.mxu0 %v1984_v34 }
 0x14e   :  { %1736 = vmatpush3.bf16.msra.mxu1 %v1979_v15 }
 0x14f   :  { %1737 = vmatprep.subr.bf16.mxu1 %v1981_v31 }
 0x150   :  { %1756 = vmatpush3.bf16.msra.mxu0 %v1984_v34  ;;  %v464_v34 = vpop.permute.xlu0 %463 }
 0x151   :  { %1757 = vmatprep.subr.bf16.mxu0 %v1986_v36 }
 0x152   :  { %1738 = vmatpush3.bf16.msra.mxu1 %v1981_v31 }
 0x153   :  { %1739 = vmatprep.subr.bf16.mxu1 %v1983_v33 }
 0x154   :  { %1758 = vmatpush3.bf16.msra.mxu0 %v1986_v36  ;;  %v1989_v36 = vld [vmem:[#allocation6 + $0xa8] sm:$0xff]  }
 0x155   :  { %1759 = vmatprep.subr.bf16.mxu0 %v1988_v37 }
 0x156   :  { %1740 = vmatpush3.bf16.msra.mxu1 %v1983_v33  ;;  %v474_v33 = vpop.permute.xlu1 %473 }
 0x157   :  { %1765 = vmatprep.subr.bf16.mxu1 %v2374_v35 }
 0x158   :  { %1760 = vmatpush3.bf16.msra.mxu0 %v1988_v37 }
 0x159   :  { %1785 = vmatprep.subr.mxu0 %v2153_v0 }
 0x1f9   :  { %v326_v38 = vpop.f32.mrf.mxu1 }
 0x1fa   :  { %v330_v39 = vmul.f32 0.001953125, %v326_v38 }
 0x1fb   :  { %v1689_v40 = vpop.f32.mrf.mxu1  ;;  %v397_v42 = vpop.f32.mrf.mxu0 }
 0x1fc   :  { %v402_v45 = vmul.f32 %v330_v39, %v330_v39  ;;  %v401_v47 = vmul.f32 0.001953125, %v397_v42 }
 0x1fd   :  { %v1724_v48 = vpop.f32.mrf.mxu0 }
 0x1fe   :  { %v403_v49 = vsub.f32 %v401_v47, %v402_v45  ;;  %v490_v48 = vpop.permute.xlu1 %489 }
 0x200   :  { %v404_v50 = vadd.f32 1e-05, %v403_v49 }
 0x202   :  { %2003 = vrsqrt.f32 %v404_v50  ;;  %v486_v50 = vpop.permute.xlu0 %485 }
 0x20f   :  { %v2004_v55 = vpop.eup %2003 }
 0x210   :  { %v406_v56 = vmul.f32 %v2004_v55, %v220_v53 }
 0x212   :  { %v407_v58 = vmul.f32 %v406_v56, %v330_v39  ;;  %v412_v59 = vrot.slane %v406_v56, %v2378_v54 }
 0x214   :  { %v408_v60 = vsub.f32 %v221_v57, %v407_v58  ;;  %v413_v61 = vmul.f32 %v412_v59, %v2354_v41  ;;  %v414_v62 = vmul.f32 %v412_v59, %v2358_v44  ;;  %v415_v63 = vmul.f32 %v412_v59, %v2356_v43 }
 0x215   :  { %v416_v1 = vmul.f32 %v412_v59, %v2362_v46  ;;  %v1991_v59 = vld [vmem:[#allocation6 + $0x98] sm:$0xff]  }
 0x216   :  { %v420_v2 = vrot.slane %v408_v60, %v2378_v54  ;;  %v1992_v60 = vld [vmem:[#allocation6 + $0x90] sm:$0xff]  }
 0x218   :  { %v421_v3 = vadd.f32 %v420_v2, %v413_v61  ;;  %v422_v4 = vadd.f32 %v420_v2, %v414_v62  ;;  %v423_v5 = vadd.f32 %v420_v2, %v415_v63  ;;  %v424_v6 = vadd.f32 %v420_v2, %v416_v1  ;;  %v1993_v61 = vld [vmem:[#allocation6 + $0x88] sm:$0xff]   ;;  %v1994_v62 = vld [vmem:[#allocation6 + $0x80] sm:$0xff]   ;;  %v494_v63 = vpop.permute.xlu1 %493  ;;  %v498_v2 = vpop.permute.xlu0 %497 }
 0x21a   :  { %vm426_vm1 = vcmp.ge.f32.partialorder %v421_v3, 0.0  ;;  %vm427_vm2 = vcmp.ge.f32.partialorder %v422_v4, 0.0  ;;  %vm428_vm3 = vcmp.ge.f32.partialorder %v423_v5, 0.0  ;;  %vm429_vm4 = vcmp.ge.f32.partialorder %v424_v6, 0.0 }
 0x21b   :  { %v434_v41 = vmul.f32 %v1446_v7, %v421_v3  ;;  %v435_v12 = vmul.f32 %v1446_v7, %v422_v4  ;;  %v436_v44 = vmul.f32 %v1446_v7, %v423_v5  ;;  %v437_v13 = vmul.f32 %v1446_v7, %v424_v6 }
 0x21d   :  { %v438_v43 = vsel %vm426_vm1, %v421_v3, %v434_v41  ;;  %v439_v14 = vsel %vm427_vm2, %v422_v4, %v435_v12  ;;  %v440_v46 = vsel %vm428_vm3, %v423_v5, %v436_v44  ;;  %v441_v15 = vsel %vm429_vm4, %v424_v6, %v437_v13 }
 0x21e   :  { %444 = vst [vmem:[#allocation2 + $0x8] sm:$0xff] %v438_v43  ;;  %445 = vst [vmem:[#allocation2 + $0x10] sm:$0xff] %v439_v14  ;;  %v538_v16 = vpack.c.bf16 %v439_v14, %v438_v43  ;;  %v539_v31 = vpack.c.bf16 %v441_v15, %v440_v46 }
 0x21f   :  { %446 = vst [vmem:[#allocation2 + $0x18] sm:$0xff] %v440_v46  ;;  %447 = vst [vmem:[#allocation2 + $0x20] sm:$0xff] %v441_v15 }
 0x220   :  { %1741 = vmatprep.mubr.bf16.mxu1 %v538_v16 }
 0x221   :  { %1742 = vmatmul.mubr.bf16.vlgmr.msra.gmra.mxu1 %v539_v31 }
 0x222   :  { %1766 = vmatpush3.bf16.msra.mxu1 %v2374_v35  ;;  %v1990_v35 = vld [vmem:[#allocation6 + $0xa0] sm:$0xff]  }
 0x223   :  { %1767 = vmatprep.subr.bf16.mxu1 %v1987_v32 }
 0x225   :  { %v448_v38 = vld [vmem:[#allocation2 + $0x7] sm:$0xff]  ;;  %v449_v47 = vld [vmem:[#allocation2 + $0xf] sm:$0xff] }
 0x226   :  { %v450_v37 = vld [vmem:[#allocation2 + $0x17] sm:$0xff]  ;;  %v451_v39 = vld [vmem:[#allocation2 + $0x1f] sm:$0xff]  ;;  %v476_v42 = vmul.f32 %v459_v11, %v448_v38  ;;  %v480_v51 = vld [vmem:[#allocation2 + $0x9] sm:$0xff]  ;;  %1768 = vmatpush3.bf16.msra.mxu1 %v1987_v32  ;;  %v477_v52 = vmul.f32 %v464_v34, %v449_v47 }
 0x227   :  { %v478_v40 = vmul.f32 %v469_v10, %v450_v37  ;;  %v479_v45 = vmul.f32 %v474_v33, %v451_v39  ;;  %v481_v49 = vld [vmem:[#allocation2 + $0x11] sm:$0xff]  ;;  %v500_v55 = vmul.f32 %v486_v50, %v480_v51  ;;  %1769 = vmatprep.subr.bf16.mxu1 %v1989_v36  ;;  %v482_v1 = vld [vmem:[#allocation2 + $0x19] sm:$0xff]  ;;  %v483_v3 = vld [vmem:[#allocation2 + $0x21] sm:$0xff] }
 0x228   :  { %v501_v53 = vmul.f32 %v490_v48, %v481_v49  ;;  %v520_v57 = vpack.c.bf16 %v477_v52, %v476_v42  ;;  %v502_v4 = vmul.f32 %v494_v63, %v482_v1  ;;  %v503_v5 = vmul.f32 %v498_v2, %v483_v3  ;;  %v1471_v37 = vld [vmem:[#allocation11 + $0x4] ss:$0 sm:$0xff] }
 0x229   :  { %v521_v56 = vpack.c.bf16 %v479_v45, %v478_v40 }
 0x22a   :  { %v750_v58 = vpack.c.bf16 %v501_v53, %v500_v55  ;;  %1770 = vmatpush3.bf16.msra.mxu1 %v1989_v36  ;;  %1761 = vmatprep.mubr.bf16.mxu0 %v520_v57  ;;  %v751_v6 = vpack.c.bf16 %v503_v5, %v502_v4 }
 0x22b   :  { %1762 = vmatmul.mubr.bf16.vlgmr.msra.gmra.mxu0 %v521_v56  ;;  %1771 = vmatprep.subr.bf16.mxu1 %v1990_v35 }
 0x22c   :  { %1781 = vmatprep.mubr.bf16.mxu1 %v750_v58  ;;  %1786 = vmatpush3.msra.mxu0 %v2237_v8 }
 0x22d   :  { %1817 = vmatprep.mubr.msk.f32.mxu0 %vm2154_vm0, %v2153_v0  ;;  %1787 = vmatprep.subr.mxu0 %v2153_v0 }
 0x22e   :  { %1772 = vmatpush3.bf16.msra.mxu1 %v1990_v35  ;;  %1788 = vmatpush3.msra.mxu0 %v2239_v9 }
 0x22f   :  { %1773 = vmatprep.subr.bf16.mxu1 %v1991_v59  ;;  %1789 = vmatprep.subr.mxu0 %v2153_v0 }
 0x230   :  { %1790 = vmatpush3.msra.mxu0 %v2256_v17 }
 0x231   :  { %1791 = vmatprep.subr.mxu0 %v2153_v0 }
 0x232   :  { %1774 = vmatpush3.bf16.msra.mxu1 %v1991_v59  ;;  %1792 = vmatpush3.msra.mxu0 %v2261_v18 }
 0x233   :  { %1775 = vmatprep.subr.bf16.mxu1 %v1992_v60  ;;  %1793 = vmatprep.subr.mxu0 %v2153_v0 }
 0x234   :  { %1794 = vmatpush3.msra.mxu0 %v2267_v19 }
 0x235   :  { %1795 = vmatprep.subr.mxu0 %v2153_v0 }
 0x236   :  { %1776 = vmatpush3.bf16.msra.mxu1 %v1992_v60  ;;  %1796 = vmatpush3.msra.mxu0 %v2273_v20 }
 0x237   :  { %1777 = vmatprep.subr.bf16.mxu1 %v1993_v61  ;;  %1797 = vmatprep.subr.mxu0 %v2153_v0 }
 0x238   :  { %1798 = vmatpush3.msra.mxu0 %v2279_v21 }
 0x239   :  { %1799 = vmatprep.subr.mxu0 %v2153_v0 }
 0x23a   :  { %1778 = vmatpush3.bf16.msra.mxu1 %v1993_v61  ;;  %1800 = vmatpush3.msra.mxu0 %v2285_v22 }
 0x23b   :  { %1779 = vmatprep.subr.bf16.mxu1 %v1994_v62  ;;  %1801 = vmatprep.subr.mxu0 %v2153_v0 }
 0x23c   :  { %1802 = vmatpush3.msra.mxu0 %v2291_v23 }
 0x23d   :  { %1803 = vmatprep.subr.mxu0 %v2153_v0 }
 0x23e   :  { %1780 = vmatpush3.bf16.msra.mxu1 %v1994_v62  ;;  %1804 = vmatpush3.msra.mxu0 %v2297_v24 }
 0x23f   :  { %1820 = vmatprep.subr.mxu1 %v2153_v0  ;;  %1805 = vmatprep.subr.mxu0 %v2153_v0 }
 0x240   :  { %1806 = vmatpush3.msra.mxu0 %v2303_v25 }
 0x241   :  { %1782 = vmatmul.mubr.bf16.vlgmr.msra.gmra.mxu1 %v751_v6  ;;  %1807 = vmatprep.subr.mxu0 %v2153_v0 }
 0x242   :  { %1821 = vmatpush3.msra.mxu1 %v2237_v8  ;;  %1808 = vmatpush3.msra.mxu0 %v2309_v26 }
 0x243   :  { %1822 = vmatprep.subr.mxu1 %v2153_v0  ;;  %1809 = vmatprep.subr.mxu0 %v2153_v0 }
 0x244   :  { %1823 = vmatpush3.msra.mxu1 %v2239_v9  ;;  %1810 = vmatpush3.msra.mxu0 %v2312_v27 }
 0x245   :  { %1824 = vmatprep.subr.mxu1 %v2153_v0  ;;  %1811 = vmatprep.subr.mxu0 %v2153_v0 }
 0x246   :  { %1825 = vmatpush3.msra.mxu1 %v2256_v17  ;;  %1812 = vmatpush3.msra.mxu0 %v2318_v28 }
 0x247   :  { %1826 = vmatprep.subr.mxu1 %v2153_v0  ;;  %1813 = vmatprep.subr.mxu0 %v2153_v0 }
 0x248   :  { %1827 = vmatpush3.msra.mxu1 %v2261_v18  ;;  %1814 = vmatpush3.msra.mxu0 %v2324_v29 }
 0x249   :  { %1828 = vmatprep.subr.mxu1 %v2153_v0  ;;  %1815 = vmatprep.subr.mxu0 %v2153_v0 }
 0x24a   :  { %1829 = vmatpush3.msra.mxu1 %v2267_v19  ;;  %1816 = vmatpush3.msra.mxu0 %v2330_v30 }
 0x24b   :  { %1830 = vmatprep.subr.mxu1 %v2153_v0  ;;  %1852 = vmatprep.mubr.msk.f32.mxu1 %vm2154_vm0, %v2153_v0 }
 0x24c   :  { %1831 = vmatpush3.msra.mxu1 %v2273_v20 }
 0x24d   :  { %1832 = vmatprep.subr.mxu1 %v2153_v0 }
 0x24e   :  { %1833 = vmatpush3.msra.mxu1 %v2279_v21 }
 0x24f   :  { %1834 = vmatprep.subr.mxu1 %v2153_v0 }
 0x250   :  { %1835 = vmatpush3.msra.mxu1 %v2285_v22 }
 0x251   :  { %1836 = vmatprep.subr.mxu1 %v2153_v0 }
 0x252   :  { %1837 = vmatpush3.msra.mxu1 %v2291_v23 }
 0x253   :  { %1838 = vmatprep.subr.mxu1 %v2153_v0 }
 0x254   :  { %1839 = vmatpush3.msra.mxu1 %v2297_v24 }
 0x255   :  { %1840 = vmatprep.subr.mxu1 %v2153_v0 }
 0x256   :  { %1841 = vmatpush3.msra.mxu1 %v2303_v25 }
 0x257   :  { %1842 = vmatprep.subr.mxu1 %v2153_v0 }
 0x258   :  { %1843 = vmatpush3.msra.mxu1 %v2309_v26 }
 0x259   :  { %1844 = vmatprep.subr.mxu1 %v2153_v0 }
 0x25a   :  { %1845 = vmatpush3.msra.mxu1 %v2312_v27 }
 0x25b   :  { %1846 = vmatprep.subr.mxu1 %v2153_v0 }
 0x25c   :  { %1847 = vmatpush3.msra.mxu1 %v2318_v28 }
 0x25d   :  { %1848 = vmatprep.subr.mxu1 %v2153_v0 }
 0x25e   :  { %1849 = vmatpush3.msra.mxu1 %v2324_v29 }
 0x25f   :  { %1850 = vmatprep.subr.mxu1 %v2153_v0 }
 0x260   :  { %1851 = vmatpush3.msra.mxu1 %v2330_v30 }
 0x261   :  { %1875 = vmatprep.subr.mxu1 %v2153_v0 }
 0x2e1   :  { %v1743_v7 = vpop.f32.mrf.mxu1 }
 0x2e3   :  { %v622_v10 = vpop.f32.mrf.mxu1 }
 0x2e5   :  { %v1744_v41 = vpop.f32.mrf.mxu1 }
 0x2e7   :  { %v625_v44 = vpop.f32.mrf.mxu1 }
 0x2eb   :  { %v1763_v11 = vpop.f32.mrf.mxu0 }
 0x2ec   :  { %v728_v16 = vadd.f32 %v1763_v11, %v1743_v7  ;;  %v2476_v7 = vld [vmem:[#allocation2] sm:$0xff]  ;;  %v1998_v11 = vld [vmem:[#allocation8 + $0x20] sm:$0xff]  }
 0x2ed   :  { %v719_v12 = vpop.f32.mrf.mxu0 }
 0x2ee   :  { %v720_v14 = vadd.f32 %v719_v12, %v622_v10  ;;  %v1997_v10 = vld [vmem:[#allocation8 + $0x28] sm:$0xff]   ;;  %v2000_v12 = vld [vmem:[#allocation8 + $0x10] sm:$0xff]  }
 0x2ef   :  { %v1764_v13 = vpop.f32.mrf.mxu0 }
 0x2f0   :  { %v731_v33 = vadd.f32 %v1764_v13, %v1744_v41  ;;  %v1999_v41 = vld [vmem:[#allocation8 + $0x18] sm:$0xff]   ;;  %v2002_v13 = vld [vmem:[#allocation8] sm:$0xff]  }
 0x2f1   :  { %v722_v46 = vpop.f32.mrf.mxu0 }
 0x2f2   :  { %v723_v34 = vadd.f32 %v722_v46, %v625_v44  ;;  %v2001_v44 = vld [vmem:[#allocation8 + $0x8] sm:$0xff]  }
 0x301   :  { %v1783_v43 = vpop.f32.mrf.mxu1 }
 0x302   :  { %v851_v36 = vadd.f32 %v1783_v43, %v728_v16 }
 0x303   :  { %v834_v15 = vpop.f32.mrf.mxu1 }
 0x304   :  { %v849_v31 = vadd.f32 %v834_v15, %v720_v14  ;;  %v2457_v42 = vadd.f32 %v1471_v37, %v851_v36  ;;  %v862_v36 = vld [vmem:[#allocation11 + $0x5] sm:$0x1] }
 0x305   :  { %v1784_v32 = vpop.f32.mrf.mxu1 }
 0x306   :  { %v2455_v0 = vadd.f32 %v1471_v37, %v849_v31  ;;  %v852_v39 = vadd.f32 %v1784_v32, %v731_v33  ;;  %v875_v51 = vmul.f32 %v2457_v42, %v2457_v42 }
 0x307   :  { %v837_v38 = vpop.f32.mrf.mxu1 }
 0x308   :  { %v850_v40 = vadd.f32 %v837_v38, %v723_v34  ;;  %v873_v47 = vmul.f32 %v2455_v0, %v2455_v0  ;;  %v2463_v48 = vadd.f32 %v1471_v37, %v852_v39  ;;  %v863_v39 = vld [vmem:[#allocation11 + $0x6] sm:$0x1] }
 0x30a   :  { %v2459_v45 = vadd.f32 %v1471_v37, %v850_v40  ;;  %v876_v55 = vmul.f32 %v2463_v48, %v2463_v48 }
 0x30c   :  { %v864_v49 = vadd.f32 %v2459_v45, %v2455_v0  ;;  %v874_v50 = vmul.f32 %v2459_v45, %v2459_v45 }
 0x30e   :  { %v865_v52 = vadd.f32 %v864_v49, %v2457_v42  ;;  %v877_v53 = vadd.f32 %v874_v50, %v873_v47 }
 0x310   :  { %v866_v56 = vadd.f32 %v865_v52, %v2463_v48  ;;  %v878_v35 = vadd.f32 %v877_v53, %v875_v51 }
 0x312   :  { %v867_v57 = vrot.slane %v866_v56, 4  ;;  %v879_v58 = vadd.f32 %v878_v35, %v876_v55 }
 0x314   :  { %v868_v59 = vadd.f32 %v867_v57, %v866_v56  ;;  %v880_v60 = vrot.slane %v879_v58, 4  ;;  %v1472_v56 = vld [vmem:[#allocation11 + $0x7] ss:$0 sm:$0xff] }
 0x316   :  { %v869_v61 = vrot.slane %v868_v59, 2  ;;  %v881_v62 = vadd.f32 %v880_v60, %v879_v58 }
 0x318   :  { %v870_v63 = vadd.f32 %v869_v61, %v868_v59  ;;  %v882_v1 = vrot.slane %v881_v62, 2 }
 0x31a   :  { %v871_v2 = vrot.slane %v870_v63, 1  ;;  %v883_v3 = vadd.f32 %v882_v1, %v881_v62 }
 0x31c   :  { %v872_v4 = vadd.f32 %v871_v2, %v870_v63  ;;  %v884_v5 = vrot.slane %v883_v3, 1 }
 0x31e   :  { %1818 = vmatmul.mubr.f32.vlgmr.msra.gmra.mxu0 %v872_v4  ;;  %v885_v6 = vadd.f32 %v884_v5, %v883_v3  ;;  %v2011_v4 = vld [vmem:[#allocation9 + $0x70] sm:$0xff] }
 0x320   :  { %1853 = vmatmul.mubr.f32.vlgmr.msra.gmra.mxu1 %v885_v6 }
 0x321   :  { %1876 = vmatpush3.msra.mxu1 %v2237_v8  ;;  %1907 = vmatprep.mubr.msk.f32.mxu1 %vm2154_vm0, %v2476_v7  ;;  %v1995_v8 = vld [vmem:[#allocation8 + $0x38] sm:$0xff]  }
 0x322   :  { %1877 = vmatprep.subr.mxu1 %v2476_v7  ;;  %1855 = vmatprep.subr.bf16.mxu0 %v1995_v8 }
 0x323   :  { %1878 = vmatpush3.msra.mxu1 %v2239_v9  ;;  %1856 = vmatpush3.bf16.msra.mxu0 %v1995_v8  ;;  %v1996_v9 = vld [vmem:[#allocation8 + $0x30] sm:$0xff]  }
 0x324   :  { %1879 = vmatprep.subr.mxu1 %v2476_v7  ;;  %1857 = vmatprep.subr.bf16.mxu0 %v1996_v9 }
 0x325   :  { %1880 = vmatpush3.msra.mxu1 %v2256_v17 }
 0x326   :  { %1881 = vmatprep.subr.mxu1 %v2476_v7 }
 0x327   :  { %1882 = vmatpush3.msra.mxu1 %v2261_v18  ;;  %1858 = vmatpush3.bf16.msra.mxu0 %v1996_v9 }
 0x328   :  { %1883 = vmatprep.subr.mxu1 %v2476_v7  ;;  %1859 = vmatprep.subr.bf16.mxu0 %v1997_v10 }
 0x329   :  { %1884 = vmatpush3.msra.mxu1 %v2267_v19 }
 0x32a   :  { %1885 = vmatprep.subr.mxu1 %v2476_v7 }
 0x32b   :  { %1886 = vmatpush3.msra.mxu1 %v2273_v20  ;;  %1860 = vmatpush3.bf16.msra.mxu0 %v1997_v10 }
 0x32c   :  { %1887 = vmatprep.subr.mxu1 %v2476_v7  ;;  %1861 = vmatprep.subr.bf16.mxu0 %v1998_v11 }
 0x32d   :  { %1888 = vmatpush3.msra.mxu1 %v2279_v21 }
 0x32e   :  { %1889 = vmatprep.subr.mxu1 %v2476_v7 }
 0x32f   :  { %1890 = vmatpush3.msra.mxu1 %v2285_v22  ;;  %1862 = vmatpush3.bf16.msra.mxu0 %v1998_v11 }
 0x330   :  { %1891 = vmatprep.subr.mxu1 %v2476_v7  ;;  %1863 = vmatprep.subr.bf16.mxu0 %v1999_v41 }
 0x331   :  { %1892 = vmatpush3.msra.mxu1 %v2291_v23 }
 0x332   :  { %1893 = vmatprep.subr.mxu1 %v2476_v7 }
 0x333   :  { %1894 = vmatpush3.msra.mxu1 %v2297_v24  ;;  %1864 = vmatpush3.bf16.msra.mxu0 %v1999_v41 }
 0x334   :  { %1895 = vmatprep.subr.mxu1 %v2476_v7  ;;  %1865 = vmatprep.subr.bf16.mxu0 %v2000_v12 }
 0x335   :  { %1896 = vmatpush3.msra.mxu1 %v2303_v25 }
 0x336   :  { %1897 = vmatprep.subr.mxu1 %v2476_v7 }
 0x337   :  { %1898 = vmatpush3.msra.mxu1 %v2309_v26  ;;  %1866 = vmatpush3.bf16.msra.mxu0 %v2000_v12 }
 0x338   :  { %1899 = vmatprep.subr.mxu1 %v2476_v7  ;;  %1867 = vmatprep.subr.bf16.mxu0 %v2001_v44 }
 0x339   :  { %1900 = vmatpush3.msra.mxu1 %v2312_v27 }
 0x33a   :  { %1901 = vmatprep.subr.mxu1 %v2476_v7 }
 0x33b   :  { %1902 = vmatpush3.msra.mxu1 %v2318_v28  ;;  %1868 = vmatpush3.bf16.msra.mxu0 %v2001_v44 }
 0x33c   :  { %1903 = vmatprep.subr.mxu1 %v2476_v7  ;;  %1869 = vmatprep.subr.bf16.mxu0 %v2002_v13 }
 0x33d   :  { %1904 = vmatpush3.msra.mxu1 %v2324_v29 }
 0x33e   :  { %1905 = vmatprep.subr.mxu1 %v2476_v7 }
 0x33f   :  { %1906 = vmatpush3.msra.mxu1 %v2330_v30  ;;  %1870 = vmatpush3.bf16.msra.mxu0 %v2002_v13 }
 0x340   :  { %1910 = vmatprep.subr.mxu0 %v2476_v7 }
 0x3de   :  { %v968_v43 = vpop.f32.mrf.mxu0 }
 0x3df   :  { %v972_v14 = vmul.f32 0.001953125, %v968_v43 }
 0x3e0   :  { %v1819_v46 = vpop.f32.mrf.mxu0  ;;  %v1039_v15 = vpop.f32.mrf.mxu1 }
 0x3e1   :  { %v1044_v16 = vmul.f32 %v972_v14, %v972_v14  ;;  %v1043_v31 = vmul.f32 0.001953125, %v1039_v15 }
 0x3e2   :  { %v1854_v32 = vpop.f32.mrf.mxu1 }
 0x3e3   :  { %v1045_v33 = vsub.f32 %v1043_v31, %v1044_v16 }
 0x3e5   :  { %v1046_v34 = vadd.f32 1e-05, %v1045_v33 }
 0x3e7   :  { %2005 = vrsqrt.f32 %v1046_v34 }
 0x3f4   :  { %v2006_v37 = vpop.eup %2005 }
 0x3f5   :  { %v1048_v38 = vmul.f32 %v2006_v37, %v862_v36 }
 0x3f7   :  { %v1049_v40 = vmul.f32 %v1048_v38, %v972_v14  ;;  %v1054_v47 = vrot.slane %v1048_v38, %v2378_v54 }
 0x3f9   :  { %v1050_v49 = vsub.f32 %v863_v39, %v1049_v40  ;;  %v1055_v50 = vmul.f32 %v1054_v47, %v2455_v0  ;;  %v1056_v51 = vmul.f32 %v1054_v47, %v2459_v45  ;;  %v1057_v53 = vmul.f32 %v1054_v47, %v2457_v42 }
 0x3fa   :  { %v1058_v55 = vmul.f32 %v1054_v47, %v2463_v48  ;;  %v2010_v48 = vld [vmem:[#allocation9 + $0x78] sm:$0xff] }
 0x3fb   :  { %v1062_v52 = vrot.slane %v1050_v49, %v2378_v54  ;;  %v1204_v49 = vld [vmem:[#allocation11 + $0x9] sm:$0x1] }
 0x3fd   :  { %v1063_v35 = vadd.f32 %v1062_v52, %v1055_v50  ;;  %v1064_v57 = vadd.f32 %v1062_v52, %v1056_v51  ;;  %v1065_v58 = vadd.f32 %v1062_v52, %v1057_v53  ;;  %v1066_v59 = vadd.f32 %v1062_v52, %v1058_v55  ;;  %v1205_v52 = vld [vmem:[#allocation11 + $0xa] sm:$0x1] }
 0x3ff   :  { %vm1068_vm5 = vcmp.ge.f32.partialorder %v1063_v35, 0.0  ;;  %vm1069_vm6 = vcmp.ge.f32.partialorder %v1064_v57, 0.0  ;;  %v1076_v60 = vmul.f32 %v1472_v56, %v1063_v35  ;;  %v1077_v61 = vmul.f32 %v1472_v56, %v1064_v57 }
 0x400   :  { %vm1070_vm7 = vcmp.ge.f32.partialorder %v1065_v58, 0.0  ;;  %vm1071_vm8 = vcmp.ge.f32.partialorder %v1066_v59, 0.0  ;;  %v1078_v0 = vmul.f32 %v1472_v56, %v1065_v58  ;;  %v1079_v62 = vmul.f32 %v1472_v56, %v1066_v59 }
 0x401   :  { %v1080_v45 = vsel %vm1068_vm5, %v1063_v35, %v1076_v60  ;;  %v1081_v63 = vsel %vm1069_vm6, %v1064_v57, %v1077_v61 }
 0x402   :  { %v1100_v1 = vpack.c.bf16 %v1081_v63, %v1080_v45  ;;  %v1082_v2 = vsel %vm1070_vm7, %v1065_v58, %v1078_v0  ;;  %v1083_v42 = vsel %vm1071_vm8, %v1066_v59, %v1079_v62  ;;  %v2012_v63 = vld [vmem:[%s2568_s0] sm:$0xff] }
 0x403   :  { %v1101_v3 = vpack.c.bf16 %v1083_v42, %v1082_v2  ;;  %v2013_v2 = vld [vmem:[%s2568_s0 + $0x8] sm:$0xff] }
 0x404   :  { %1871 = vmatprep.mubr.bf16.mxu0 %v1100_v1 }
 0x405   :  { %1872 = vmatmul.mubr.bf16.vlgmr.msra.gmra.mxu0 %v1101_v3 }
 0x406   :  { %1911 = vmatpush3.msra.mxu0 %v2010_v48  ;;  %1942 = vmatprep.mubr.msk.f32.mxu0 %vm2154_vm0, %v2476_v7  ;;  %v2015_v48 = vld [vmem:[%s2568_s0 + $0x18] sm:$0xff] }
 0x407   :  { %1912 = vmatprep.subr.mxu0 %v2476_v7 }
 0x408   :  { %1913 = vmatpush3.msra.mxu0 %v2011_v4 }
 0x409   :  { %1914 = vmatprep.subr.mxu0 %v2476_v7 }
 0x40a   :  { %1915 = vmatpush3.msra.mxu0 %v2256_v17 }
 0x40b   :  { %1916 = vmatprep.subr.mxu0 %v2476_v7 }
 0x40c   :  { %1917 = vmatpush3.msra.mxu0 %v2261_v18 }
 0x40d   :  { %1918 = vmatprep.subr.mxu0 %v2476_v7 }
 0x40e   :  { %1919 = vmatpush3.msra.mxu0 %v2267_v19  ;;  %v1473_v19 = vld [vmem:[#allocation11 + $0x8] ss:$0 sm:$0xff] }
 0x40f   :  { %1920 = vmatprep.subr.mxu0 %v2476_v7 }
 0x410   :  { %1921 = vmatpush3.msra.mxu0 %v2273_v20 }
 0x411   :  { %1922 = vmatprep.subr.mxu0 %v2476_v7 }
 0x412   :  { %1923 = vmatpush3.msra.mxu0 %v2279_v21 }
 0x413   :  { %1924 = vmatprep.subr.mxu0 %v2476_v7 }
 0x414   :  { %1925 = vmatpush3.msra.mxu0 %v2285_v22 }
 0x415   :  { %1926 = vmatprep.subr.mxu0 %v2476_v7 }
 0x416   :  { %1927 = vmatpush3.msra.mxu0 %v2291_v23 }
 0x417   :  { %1928 = vmatprep.subr.mxu0 %v2476_v7 }
 0x418   :  { %1929 = vmatpush3.msra.mxu0 %v2297_v24 }
 0x419   :  { %1930 = vmatprep.subr.mxu0 %v2476_v7 }
 0x41a   :  { %1931 = vmatpush3.msra.mxu0 %v2303_v25 }
 0x41b   :  { %1932 = vmatprep.subr.mxu0 %v2476_v7 }
 0x41c   :  { %1933 = vmatpush3.msra.mxu0 %v2309_v26 }
 0x41d   :  { %1934 = vmatprep.subr.mxu0 %v2476_v7 }
 0x41e   :  { %1935 = vmatpush3.msra.mxu0 %v2312_v27 }
 0x41f   :  { %1936 = vmatprep.subr.mxu0 %v2476_v7 }
 0x420   :  { %1937 = vmatpush3.msra.mxu0 %v2318_v28 }
 0x421   :  { %1938 = vmatprep.subr.mxu0 %v2476_v7 }
 0x422   :  { %1939 = vmatpush3.msra.mxu0 %v2324_v29 }
 0x423   :  { %1940 = vmatprep.subr.mxu0 %v2476_v7 }
 0x424   :  { %1941 = vmatpush3.msra.mxu0 %v2330_v30 }
 0x4c5   :  { %v1873_v17 = vpop.f32.mrf.mxu0 }
 0x4c6   :  { %v1198_v23 = vadd.f32 %v1873_v17, %v1473_v19  ;;  %v1482_v17 = vld [vmem:[#allocation11 + $0xb] ss:$0 sm:$0xff] }
 0x4c7   :  { %v1189_v18 = vpop.f32.mrf.mxu0 }
 0x4c8   :  { %v1190_v21 = vadd.f32 %v1473_v19, %v1189_v18  ;;  %v1217_v5 = vmul.f32 %v1198_v23, %v1198_v23 }
 0x4c9   :  { %v1874_v20 = vpop.f32.mrf.mxu0 }
 0x4ca   :  { %v1215_v25 = vmul.f32 %v1190_v21, %v1190_v21  ;;  %v1201_v26 = vadd.f32 %v1874_v20, %v1473_v19 }
 0x4cb   :  { %v1192_v22 = vpop.f32.mrf.mxu0 }
 0x4cc   :  { %v1193_v24 = vadd.f32 %v1473_v19, %v1192_v22  ;;  %v1218_v29 = vmul.f32 %v1201_v26, %v1201_v26 }
 0x4ce   :  { %v1206_v27 = vadd.f32 %v1193_v24, %v1190_v21  ;;  %v1216_v28 = vmul.f32 %v1193_v24, %v1193_v24 }
 0x4d0   :  { %v1207_v6 = vadd.f32 %v1206_v27, %v1198_v23  ;;  %v1219_v8 = vadd.f32 %v1216_v28, %v1215_v25 }
 0x4d2   :  { %v1208_v9 = vadd.f32 %v1207_v6, %v1201_v26  ;;  %v1220_v7 = vadd.f32 %v1219_v8, %v1217_v5 }
 0x4d4   :  { %v1209_v10 = vrot.slane %v1208_v9, 4  ;;  %v1221_v30 = vadd.f32 %v1220_v7, %v1218_v29 }
 0x4d6   :  { %v1210_v11 = vadd.f32 %v1209_v10, %v1208_v9  ;;  %v1222_v41 = vrot.slane %v1221_v30, 4 }
 0x4d8   :  { %v1211_v12 = vrot.slane %v1210_v11, 2  ;;  %v1223_v44 = vadd.f32 %v1222_v41, %v1221_v30 }
 0x4da   :  { %v1212_v13 = vadd.f32 %v1211_v12, %v1210_v11  ;;  %v1224_v43 = vrot.slane %v1223_v44, 2 }
 0x4dc   :  { %v1213_v14 = vrot.slane %v1212_v13, 1  ;;  %v1225_v46 = vadd.f32 %v1224_v43, %v1223_v44 }
 0x4de   :  { %v1214_v15 = vadd.f32 %v1213_v14, %v1212_v13  ;;  %v1226_v16 = vrot.slane %v1225_v46, 1 }
 0x4e0   :  { %1908 = vmatmul.mubr.f32.vlgmr.msra.gmra.mxu1 %v1214_v15  ;;  %v1227_v31 = vadd.f32 %v1226_v16, %v1225_v46 }
 0x4e2   :  { %1943 = vmatmul.mubr.f32.vlgmr.msra.gmra.mxu0 %v1227_v31 }
 0x5a0   :  { %v1294_v32 = vpop.f32.mrf.mxu1 }
 0x5a1   :  { %v1298_v33 = vmul.f32 0.001953125, %v1294_v32 }
 0x5a2   :  { %v1909_v34 = vpop.f32.mrf.mxu1  ;;  %v1365_v36 = vpop.f32.mrf.mxu0 }
 0x5a3   :  { %v1370_v37 = vmul.f32 %v1298_v33, %v1298_v33  ;;  %v1369_v38 = vmul.f32 0.001953125, %v1365_v36 }
 0x5a4   :  { %v1944_v39 = vpop.f32.mrf.mxu0 }
 0x5a5   :  { %v1371_v40 = vsub.f32 %v1369_v38, %v1370_v37 }
 0x5a7   :  { %v1372_v47 = vadd.f32 1e-05, %v1371_v40 }
 0x5a9   :  { %2007 = vrsqrt.f32 %v1372_v47 }
 0x5b6   :  { %v2008_v50 = vpop.eup %2007 }
 0x5b7   :  { %v1374_v51 = vmul.f32 %v2008_v50, %v1204_v49 }
 0x5b9   :  { %v1375_v53 = vmul.f32 %v1374_v51, %v1298_v33  ;;  %v1380_v55 = vrot.slane %v1374_v51, %v2378_v54 }
 0x5bb   :  { %v1376_v56 = vsub.f32 %v1205_v52, %v1375_v53  ;;  %v1381_v35 = vmul.f32 %v1380_v55, %v1190_v21  ;;  %v1382_v58 = vmul.f32 %v1380_v55, %v1193_v24  ;;  %v1383_v59 = vmul.f32 %v1380_v55, %v1198_v23 }
 0x5bc   :  { %v1384_v60 = vmul.f32 %v1380_v55, %v1201_v26 }
 0x5bd   :  { %v1388_v57 = vrot.slane %v1376_v56, %v2378_v54  ;;  %v2014_v54 = vld [vmem:[%s2568_s0 + $0x10] sm:$0xff]  ;;  %s2116_s0 = scalar_lea.vmem %s1424_s1, 512 }
 0x5be   :  { %p2117_p11 = scmp.ne.s32.totalorder %s1424_s1, %s2116_s0  ;;  %p2122_p13 = scmp.lt.s32.totalorder %s2116_s0, %s2116_s0 }
 0x5bf   :  { %v1389_v61 = vadd.f32 %v1388_v57, %v1381_v35  ;;  %v1390_v0 = vadd.f32 %v1388_v57, %v1382_v58  ;;  %v1391_v62 = vadd.f32 %v1388_v57, %v1383_v59  ;;  %v1392_v45 = vadd.f32 %v1388_v57, %v1384_v60 }
 0x5c0   :  { %p2123_p0 = por %p2122_p13, %p2121_p12 }
 0x5c1   :  { %v1393_v1 = vadd.f32 %v2012_v63, %v1389_v61  ;;  %v1394_v42 = vadd.f32 %v2013_v2, %v1390_v0  ;;  %v1395_v3 = vadd.f32 %v2014_v54, %v1391_v62  ;;  %v1396_v4 = vadd.f32 %v2015_v48, %v1392_v45 }
 0x5c2   :  { %p2124_p1 = pnand %p2123_p0, %p2117_p11 }
 0x5c3   :  { %vm1398_vm9 = vcmp.ge.f32.partialorder %v1393_v1, 0.0  ;;  %vm1399_vm10 = vcmp.ge.f32.partialorder %v1394_v42, 0.0  ;;  %vm1400_vm11 = vcmp.ge.f32.partialorder %v1395_v3, 0.0  ;;  %vm1401_vm12 = vcmp.ge.f32.partialorder %v1396_v4, 0.0 }
 0x5c4   :  { %v1406_v18 = vmul.f32 %v1482_v17, %v1393_v1  ;;  %v1407_v19 = vmul.f32 %v1482_v17, %v1394_v42  ;;  %v1408_v20 = vmul.f32 %v1482_v17, %v1395_v3  ;;  %v1409_v21 = vmul.f32 %v1482_v17, %v1396_v4 }
 0x5c6   :  { %v1410_v22 = vsel %vm1398_vm9, %v1393_v1, %v1406_v18  ;;  %v1411_v23 = vsel %vm1399_vm10, %v1394_v42, %v1407_v19  ;;  %v1412_v24 = vsel %vm1400_vm11, %v1395_v3, %v1408_v20  ;;  %v1413_v25 = vsel %vm1401_vm12, %v1396_v4, %v1409_v21 }
 0x5c7   :  { %1414 = vst [vmem:[#allocation12] sm:$0xff] %v1410_v22  ;;  %1415 = vst [vmem:[#allocation12 + $0x8] sm:$0xff] %v1411_v23 }
 0x5c8   :  { %1416 = vst [vmem:[#allocation12 + $0x10] sm:$0xff] %v1412_v24  ;;  %1417 = vst [vmem:[#allocation12 + $0x18] sm:$0xff] %v1413_v25 }
 0x5c9   :  { %2127 = shalt.err (!%p2124_p1)
}
 0x5ca   :  { %1429 = dma.vmem_to_hbm [thread:$0]  %s1424_s1, 512, %s2575_s7, [#allocation5], %s2148_s11, %s2148_s11, %s2149_s12  }
 0x5cb   :  { %2142 = dma.done.wait [#allocation5], 512  }
 0x5cc   :  { %2143 = vsyncadd [#allocation5], 4294966784 }
 0x5cd   :  { %1433 = vsyncpa [#allocation4], 1 }
 0x5ce   :  { %1434 = vsyncpa [#allocation7], 1 }
 0x5cf   :  { %1435 = vsyncpa [#allocation10], 1 }
 0x5d0   :  { %1436 = vsyncpa [#allocation5], 1 }

</bundles_post_ra>
